<compile_context>
chip_gen: v7x
topology: tpu7x:2x2x1
jax: 0.10.0
libtpu: 0.0.40
codegen_flags: <defaults>
</compile_context>

<pallas_src>
import functools

import jax
import jax.numpy as jnp
from jax.experimental import pallas as pl
from jax.experimental.pallas import tpu as pltpu


def _round_up(x, m):
    return (x + m - 1) // m * m


# --------------------------------------------------------------------------------------
# Kernel
# --------------------------------------------------------------------------------------
def _conv_bf16(h, w_ref, b_ref, k_size, dilation):
    """VALID dilated Conv1d in channels-first layout as K accumulated MXU dots.

    h:     (C_in, T) f32 activation value (already in VMEM / vregs)
    w_ref: (K, C_out, C_in) bf16 weight ref (VMEM resident)
    b_ref: (C_out, 1) f32 bias ref
    returns (C_out, T - (K-1)*d) f32 (bias added, no activation)
    """
    t_out = h.shape[1] - (k_size - 1) * dilation
    hb = h.astype(jnp.bfloat16)                       # MXU wants bf16 operands
    acc = jnp.dot(w_ref[0], hb[:, 0:t_out], preferred_element_type=jnp.float32)
    for kk in range(1, k_size):                       # K accumulated dots, no im2col temp
        acc = acc + jnp.dot(w_ref[kk], hb[:, kk * dilation:kk * dilation + t_out],
                            preferred_element_type=jnp.float32)
    return acc + b_ref[...]                           # (C_out, 1) broadcasts over T lanes


def _tcn_fused_kernel(*refs, expand_k, block_meta, c_stem):
    """Fused TCN forward for one batch element.

    refs = (x_ref, ew, eb, [w1, b1, w2, b2] * num_blocks, o_ref)
      x_ref: (1, C_in, T_in)   o_ref: (1, C_stem, T_out)
      ew:    (K0, C_pad, C_in) bf16       eb: (C_pad, 1) f32
      w1:    (K,  C_pad, C_pad) bf16      b1: (C_pad, 1) f32
      w2:    (1,  C_pad, C_pad) bf16      b2: (C_pad, 1) f32
    block_meta = ((k_i, dilation_i), ...)  -- static, unrolled at trace time.
    """
    x_ref = refs[0]
    o_ref = refs[-1]
    ew_ref, eb_ref = refs[1], refs[2]
    blk_refs = refs[3:-1]

    h = x_ref[0].astype(jnp.float32)                  # (C_in, T_in) torch layout, in VMEM

    # expand_conv + ReLU (Dropout == identity at inference)
    h = jnp.maximum(_conv_bf16(h, ew_ref, eb_ref, expand_k, 1), 0.0)

    for i, (k, d) in enumerate(block_meta):           # static unroll over blocks
        w1, b1, w2, b2 = blk_refs[4 * i:4 * i + 4]
        pad = (k - 1) * d // 2
        t_out = h.shape[1] - (k - 1) * d
        h1 = jnp.maximum(_conv_bf16(h, w1, b1, k, d), 0.0)     # conv1 (k, dilation) + ReLU
        h2 = jnp.maximum(_conv_bf16(h1, w2, b2, 1, 1), 0.0)    # conv2 (1x1) + ReLU
        h = h2 + h[:, pad:pad + t_out]                # residual read straight from VMEM

    o_ref[0] = h[:c_stem, :].astype(o_ref.dtype)      # drop channel padding, single store


# --------------------------------------------------------------------------------------
# Wrapper / pallas_call plumbing
# --------------------------------------------------------------------------------------
def _const_spec(arr, single_buffer):
    """BlockSpec for a grid-invariant (weight/bias) input: constant index_map keeps it
    resident in VMEM; Buffered(1) drops the pointless second pipeline buffer."""
    zeros = (0,) * arr.ndim
    kwargs = dict(pipeline_mode=pl.Buffered(1)) if single_buffer else {}
    return pl.BlockSpec(arr.shape, lambda i, z=zeros: z, **kwargs)


def _vmem_limit_bytes(param_args, io_block_bytes, c_pad, t_in):
    w_bytes = sum(int(a.size) * a.dtype.itemsize for a in param_args)
    act_bytes = 8 * c_pad * t_in * 4                  # a few f32 activation temporaries
    est = 2 * w_bytes + 2 * io_block_bytes + act_bytes
    # >= default scoped limit, capped well under physical VMEM on all chips.
    return int(min(max(2 * est, 32 * 1024 * 1024), 100 * 1024 * 1024))


def _tcn_pallas_call(x, kparams, single_buffer_weights):
    n, c_in, t_in = x.shape
    expand_k = kparams["expand_k"]
    c_stem = kparams["c_stem"]
    c_pad = kparams["c_pad"]
    block_meta = tuple((blk["k"], blk["d"]) for blk in kparams["blocks"])

    t_out = t_in - (expand_k - 1)
    for k, d in block_meta:
        t_out -= (k - 1) * d

    args = [x, kparams["expand_w"], kparams["expand_b"]]
    in_specs = [
        pl.BlockSpec((1, c_in, t_in), lambda i: (i, 0, 0)),
        _const_spec(kparams["expand_w"], single_buffer_weights),
        _const_spec(kparams["expand_b"], single_buffer_weights),
    ]
    for blk in kparams["blocks"]:
        for name in ("w1", "b1", "w2", "b2"):
            args.append(blk[name])
            in_specs.append(_const_spec(blk[name], single_buffer_weights))

    io_block_bytes = (c_in * t_in + c_stem * t_out) * x.dtype.itemsize
    kernel = functools.partial(_tcn_fused_kernel, expand_k=expand_k,
                               block_meta=block_meta, c_stem=c_stem)

    return pl.pallas_call(
        kernel,
        out_shape=jax.ShapeDtypeStruct((n, c_stem, t_out), x.dtype),
        grid=(n,),
        in_specs=in_specs,
        out_specs=pl.BlockSpec((1, c_stem, t_out), lambda i: (i, 0, 0)),
        compiler_params=pltpu.CompilerParams(
            # Batch axis shards across TensorCores (v7x megacore); neutral on v5e/v6e.
            dimension_semantics=("parallel",),
            vmem_limit_bytes=_vmem_limit_bytes(args[1:], io_block_bytes, c_pad, t_in),
        ),
    )(*args)


def tcn_forward_pallas(x_nct, kparams):
    """x_nct: (N, C_in, T) torch layout.  Returns (N, C_stem, T_out) — no transposes."""
    try:
        return _tcn_pallas_call(x_nct, kparams, single_buffer_weights=True)
    except Exception:
        # pl.Buffered(1) not accepted by this Pallas/Mosaic build -> default buffering.
        return _tcn_pallas_call(x_nct, kparams, single_buffer_weights=False)


# --------------------------------------------------------------------------------------
# Parameters (torch layout) and one-time kernel-layout preparation
# --------------------------------------------------------------------------------------
def init_tcn_params(key, in_channels, stem_channels, num_blocks, kernel_sizes):
    """Deterministic synthetic parameters in torch layout (C_out, C_in, K)."""
    def conv_param(key, c_in, c_out, k):
        kw, kb = jax.random.split(key)
        scale = 1.0 / jnp.sqrt(c_in * k)
        w = jax.random.normal(kw, (c_out, c_in, k), jnp.float32) * scale
        b = jax.random.normal(kb, (c_out,), jnp.float32) * scale
        return w, b

    keys = jax.random.split(key, 1 + 2 * num_blocks)
    params = {}
    params["expand_w"], params["expand_b"] = conv_param(
        keys[0], in_channels, stem_channels, kernel_sizes[0])
    params["blocks"] = []
    dilation = kernel_sizes[0]
    for i in range(1, num_blocks + 1):
        k = kernel_sizes[i]
        w1, b1 = conv_param(keys[2 * i - 1], stem_channels, stem_channels, k)
        w2, b2 = conv_param(keys[2 * i], stem_channels, stem_channels, 1)
        params["blocks"].append(
            dict(k=k, dilation=dilation, w1=w1, b1=b1, w2=w2, b2=b2))
        dilation *= k
    return params


def prepare_kernel_params(params):
    """ONE-TIME transform of torch-layout params into kernel layout:
    weights stacked as (K, C_out_pad, C_in_pad) **bf16**, biases as (C_out_pad, 1) f32.
    Channels are zero-padded up to a sublane multiple (8); padded channels stay exactly
    zero through every conv/ReLU/residual, so the math is unchanged."""
    c_stem = int(params["expand_w"].shape[0])
    c_in = int(params["expand_w"].shape[1])
    c_pad = _round_up(c_stem, 8)

    def stack_w(w, c_in_pad):
        c_out, ci, k = w.shape
        wk = jnp.transpose(w, (2, 0, 1))              # (K, C_out, C_in)
        wk = jnp.pad(wk, ((0, 0), (0, c_pad - c_out), (0, c_in_pad - ci)))
        return wk.astype(jnp.bfloat16)                # bf16 once, at param-prep time

    def pad_b(b):
        return jnp.pad(b, (0, c_pad - b.shape[0])).astype(jnp.float32)[:, None]

    kp = {
        "expand_k": int(params["expand_w"].shape[2]),
        "c_stem": c_stem,
        "c_pad": c_pad,
        "expand_w": stack_w(params["expand_w"], c_in),
        "expand_b": pad_b(params["expand_b"]),
        "blocks": [],
    }
    for blk in params["blocks"]:
        kp["blocks"].append(dict(
            k=int(blk["k"]), d=int(blk["dilation"]),
            w1=stack_w(blk["w1"], c_pad), b1=pad_b(blk["b1"]),
            w2=stack_w(blk["w2"], c_pad), b2=pad_b(blk["b2"])))
    return kp


# --------------------------------------------------------------------------------------
# Pure-JAX reference (f32) for validation
# --------------------------------------------------------------------------------------
def tcn_forward_reference(x_nct, params):
    """Pure-JAX reference using lax.conv_general_dilated (matches torch Conv1d VALID)."""
    def conv(x, w, b, dilation):
        y = jax.lax.conv_general_dilated(
            x, w, window_strides=(1,), padding="VALID",
            rhs_dilation=(dilation,), dimension_numbers=("NCH", "OIH", "NCH"))
        return jnp.maximum(y + b[None, :, None], 0.0)

    x = conv(x_nct, params["expand_w"], params["expand_b"], 1)
    for blk in params["blocks"]:
        k, d = blk["k"], blk["dilation"]
        pad = (k - 1) * d // 2
        h = conv(x, blk["w1"], blk["b1"], d)
        out = conv(h, blk["w2"], blk["b2"], 1)
        x = out + x[:, :, pad:x.shape[2] - pad]
    return x


if __name__ == "__main__":
    # Small config consistent with the module: TCN(in_channels=16, stem_channels=32,
    # num_blocks=2, kernel_sizes=(3,3,3), causal=False, residual=True).
    N, C_IN, T = 2, 16, 34           # receptive field = 1 + 2 + 6 + 18 = 27 <= 34
    STEM, NUM_BLOCKS, KS = 32, 2, (3, 3, 3)

    key = jax.random.PRNGKey(0)
    k_x, k_p = jax.random.split(key)
    x = jax.random.normal(k_x, (N, C_IN, T), jnp.float32)           # torch layout N,C,T
    params = init_tcn_params(k_p, C_IN, STEM, NUM_BLOCKS, KS)
    kparams = prepare_kernel_params(params)                         # weight prep done once

    out = tcn_forward_pallas(x, kparams)
    out = jax.block_until_ready(out)

    ref = tcn_forward_reference(x, params)
    assert out.shape == ref.shape == (N, STEM, T - 26), (out.shape, ref.shape)
    max_err = float(jnp.max(jnp.abs(out - ref)))
    # bf16 MXU operands with f32 accumulation -> slightly looser tolerance vs f32 ref.
    assert jnp.allclose(out, ref, rtol=5e-2, atol=5e-2), f"mismatch vs reference ({max_err})"

    print("KERNEL_OK")
</pallas_src>

<mosaic_0001>
module attributes {stable_mosaic.version = 11 : i64} {
  func.func @_tcn_fused_kernel(%arg0: i32, %arg1: memref<1x16x34xf32, #tpu.memory_space<vmem>>, %arg2: memref<3x32x16xbf16, #tpu.memory_space<vmem>>, %arg3: memref<32x1xf32, #tpu.memory_space<vmem>>, %arg4: memref<3x32x32xbf16, #tpu.memory_space<vmem>>, %arg5: memref<32x1xf32, #tpu.memory_space<vmem>>, %arg6: memref<1x32x32xbf16, #tpu.memory_space<vmem>>, %arg7: memref<32x1xf32, #tpu.memory_space<vmem>>, %arg8: memref<3x32x32xbf16, #tpu.memory_space<vmem>>, %arg9: memref<32x1xf32, #tpu.memory_space<vmem>>, %arg10: memref<1x32x32xbf16, #tpu.memory_space<vmem>>, %arg11: memref<32x1xf32, #tpu.memory_space<vmem>>, %arg12: memref<1x32x8xf32, #tpu.memory_space<vmem>>) attributes {dimension_semantics = [#tpu.dimension_semantics<parallel>], iteration_bounds = array<i64: 2>, scalar_prefetch = 0 : i64, scratch_operands = 0 : i64, tpu.core_type = #tpu.core_type<tc>, window_params = [{transform_indices = @transform_0, window_bounds = array<i64: 1, 16, 34>}, {pipeline_mode = #tpu.pipeline_mode<synchronous>, transform_indices = @transform_1, window_bounds = array<i64: 3, 32, 16>}, {pipeline_mode = #tpu.pipeline_mode<synchronous>, transform_indices = @transform_2, window_bounds = array<i64: 32, 1>}, {pipeline_mode = #tpu.pipeline_mode<synchronous>, transform_indices = @transform_3, window_bounds = array<i64: 3, 32, 32>}, {pipeline_mode = #tpu.pipeline_mode<synchronous>, transform_indices = @transform_4, window_bounds = array<i64: 32, 1>}, {pipeline_mode = #tpu.pipeline_mode<synchronous>, transform_indices = @transform_5, window_bounds = array<i64: 1, 32, 32>}, {pipeline_mode = #tpu.pipeline_mode<synchronous>, transform_indices = @transform_6, window_bounds = array<i64: 32, 1>}, {pipeline_mode = #tpu.pipeline_mode<synchronous>, transform_indices = @transform_7, window_bounds = array<i64: 3, 32, 32>}, {pipeline_mode = #tpu.pipeline_mode<synchronous>, transform_indices = @transform_8, window_bounds = array<i64: 32, 1>}, {pipeline_mode = #tpu.pipeline_mode<synchronous>, transform_indices = @transform_9, window_bounds = array<i64: 1, 32, 32>}, {pipeline_mode = #tpu.pipeline_mode<synchronous>, transform_indices = @transform_10, window_bounds = array<i64: 32, 1>}, {transform_indices = @transform_11, window_bounds = array<i64: 1, 32, 8>}]} {
    %c0 = arith.constant 0 : index
    %c0_0 = arith.constant 0 : index
    %c0_1 = arith.constant 0 : index
    %0 = vector.load %arg1[%c0, %c0_0, %c0_1] : memref<1x16x34xf32, #tpu.memory_space<vmem>>, vector<1x16x34xf32>
    %1 = vector.shape_cast %0 : vector<1x16x34xf32> to vector<16x34xf32>
    %2 = arith.truncf %1 : vector<16x34xf32> to vector<16x34xbf16>
    %c0_2 = arith.constant 0 : index
    %c0_3 = arith.constant 0 : index
    %c0_4 = arith.constant 0 : index
    %3 = vector.load %arg2[%c0_2, %c0_3, %c0_4] : memref<3x32x16xbf16, #tpu.memory_space<vmem>>, vector<1x32x16xbf16>
    %4 = vector.shape_cast %3 : vector<1x32x16xbf16> to vector<32x16xbf16>
    %5 = vector.extract_strided_slice %2 {offsets = [0, 0], sizes = [16, 32], strides = [1, 1]} : vector<16x34xbf16> to vector<16x32xbf16>
    %cst = arith.constant dense<0.000000e+00> : vector<32x32xf32>
    %6 = tpu.matmul %4, %5, %cst {dimension_numbers = #tpu.dot_dimension_numbers<[1], [0], [0], [1], [0, 0, 1, 1], [], []>} : vector<32x16xbf16>, vector<16x32xbf16>, vector<32x32xf32> -> vector<32x32xf32>
    %c1 = arith.constant 1 : index
    %c0_5 = arith.constant 0 : index
    %c0_6 = arith.constant 0 : index
    %7 = vector.load %arg2[%c1, %c0_5, %c0_6] : memref<3x32x16xbf16, #tpu.memory_space<vmem>>, vector<1x32x16xbf16>
    %8 = vector.shape_cast %7 : vector<1x32x16xbf16> to vector<32x16xbf16>
    %9 = vector.extract_strided_slice %2 {offsets = [0, 1], sizes = [16, 32], strides = [1, 1]} : vector<16x34xbf16> to vector<16x32xbf16>
    %cst_7 = arith.constant dense<0.000000e+00> : vector<32x32xf32>
    %10 = tpu.matmul %8, %9, %cst_7 {dimension_numbers = #tpu.dot_dimension_numbers<[1], [0], [0], [1], [0, 0, 1, 1], [], []>} : vector<32x16xbf16>, vector<16x32xbf16>, vector<32x32xf32> -> vector<32x32xf32>
    %11 = arith.addf %6, %10 : vector<32x32xf32>
    %c2 = arith.constant 2 : index
    %c0_8 = arith.constant 0 : index
    %c0_9 = arith.constant 0 : index
    %12 = vector.load %arg2[%c2, %c0_8, %c0_9] : memref<3x32x16xbf16, #tpu.memory_space<vmem>>, vector<1x32x16xbf16>
    %13 = vector.shape_cast %12 : vector<1x32x16xbf16> to vector<32x16xbf16>
    %14 = vector.extract_strided_slice %2 {offsets = [0, 2], sizes = [16, 32], strides = [1, 1]} : vector<16x34xbf16> to vector<16x32xbf16>
    %cst_10 = arith.constant dense<0.000000e+00> : vector<32x32xf32>
    %15 = tpu.matmul %13, %14, %cst_10 {dimension_numbers = #tpu.dot_dimension_numbers<[1], [0], [0], [1], [0, 0, 1, 1], [], []>} : vector<32x16xbf16>, vector<16x32xbf16>, vector<32x32xf32> -> vector<32x32xf32>
    %16 = arith.addf %11, %15 : vector<32x32xf32>
    %c0_11 = arith.constant 0 : index
    %c0_12 = arith.constant 0 : index
    %17 = vector.load %arg3[%c0_11, %c0_12] : memref<32x1xf32, #tpu.memory_space<vmem>>, vector<32x1xf32>
    %18 = vector.broadcast %17 : vector<32x1xf32> to vector<32x32xf32>
    %19 = arith.addf %16, %18 : vector<32x32xf32>
    %cst_13 = arith.constant 0.000000e+00 : f32
    %20 = vector.broadcast %cst_13 : f32 to vector<32x32xf32>
    %21 = arith.maximumf %19, %20 : vector<32x32xf32>
    %22 = arith.truncf %21 : vector<32x32xf32> to vector<32x32xbf16>
    %c0_14 = arith.constant 0 : index
    %c0_15 = arith.constant 0 : index
    %c0_16 = arith.constant 0 : index
    %23 = vector.load %arg4[%c0_14, %c0_15, %c0_16] : memref<3x32x32xbf16, #tpu.memory_space<vmem>>, vector<1x32x32xbf16>
    %24 = vector.shape_cast %23 : vector<1x32x32xbf16> to vector<32x32xbf16>
    %25 = vector.extract_strided_slice %22 {offsets = [0, 0], sizes = [32, 26], strides = [1, 1]} : vector<32x32xbf16> to vector<32x26xbf16>
    %cst_17 = arith.constant dense<0.000000e+00> : vector<32x26xf32>
    %26 = tpu.matmul %24, %25, %cst_17 {dimension_numbers = #tpu.dot_dimension_numbers<[1], [0], [0], [1], [0, 0, 1, 1], [], []>} : vector<32x32xbf16>, vector<32x26xbf16>, vector<32x26xf32> -> vector<32x26xf32>
    %c1_18 = arith.constant 1 : index
    %c0_19 = arith.constant 0 : index
    %c0_20 = arith.constant 0 : index
    %27 = vector.load %arg4[%c1_18, %c0_19, %c0_20] : memref<3x32x32xbf16, #tpu.memory_space<vmem>>, vector<1x32x32xbf16>
    %28 = vector.shape_cast %27 : vector<1x32x32xbf16> to vector<32x32xbf16>
    %29 = vector.extract_strided_slice %22 {offsets = [0, 3], sizes = [32, 26], strides = [1, 1]} : vector<32x32xbf16> to vector<32x26xbf16>
    %cst_21 = arith.constant dense<0.000000e+00> : vector<32x26xf32>
    %30 = tpu.matmul %28, %29, %cst_21 {dimension_numbers = #tpu.dot_dimension_numbers<[1], [0], [0], [1], [0, 0, 1, 1], [], []>} : vector<32x32xbf16>, vector<32x26xbf16>, vector<32x26xf32> -> vector<32x26xf32>
    %31 = arith.addf %26, %30 : vector<32x26xf32>
    %c2_22 = arith.constant 2 : index
    %c0_23 = arith.constant 0 : index
    %c0_24 = arith.constant 0 : index
    %32 = vector.load %arg4[%c2_22, %c0_23, %c0_24] : memref<3x32x32xbf16, #tpu.memory_space<vmem>>, vector<1x32x32xbf16>
    %33 = vector.shape_cast %32 : vector<1x32x32xbf16> to vector<32x32xbf16>
    %34 = vector.extract_strided_slice %22 {offsets = [0, 6], sizes = [32, 26], strides = [1, 1]} : vector<32x32xbf16> to vector<32x26xbf16>
    %cst_25 = arith.constant dense<0.000000e+00> : vector<32x26xf32>
    %35 = tpu.matmul %33, %34, %cst_25 {dimension_numbers = #tpu.dot_dimension_numbers<[1], [0], [0], [1], [0, 0, 1, 1], [], []>} : vector<32x32xbf16>, vector<32x26xbf16>, vector<32x26xf32> -> vector<32x26xf32>
    %36 = arith.addf %31, %35 : vector<32x26xf32>
    %c0_26 = arith.constant 0 : index
    %c0_27 = arith.constant 0 : index
    %37 = vector.load %arg5[%c0_26, %c0_27] : memref<32x1xf32, #tpu.memory_space<vmem>>, vector<32x1xf32>
    %38 = vector.broadcast %37 : vector<32x1xf32> to vector<32x26xf32>
    %39 = arith.addf %36, %38 : vector<32x26xf32>
    %cst_28 = arith.constant 0.000000e+00 : f32
    %40 = vector.broadcast %cst_28 : f32 to vector<32x26xf32>
    %41 = arith.maximumf %39, %40 : vector<32x26xf32>
    %42 = arith.truncf %41 : vector<32x26xf32> to vector<32x26xbf16>
    %c0_29 = arith.constant 0 : index
    %c0_30 = arith.constant 0 : index
    %c0_31 = arith.constant 0 : index
    %43 = vector.load %arg6[%c0_29, %c0_30, %c0_31] : memref<1x32x32xbf16, #tpu.memory_space<vmem>>, vector<1x32x32xbf16>
    %44 = vector.shape_cast %43 : vector<1x32x32xbf16> to vector<32x32xbf16>
    %cst_32 = arith.constant dense<0.000000e+00> : vector<32x26xf32>
    %45 = tpu.matmul %44, %42, %cst_32 {dimension_numbers = #tpu.dot_dimension_numbers<[1], [0], [0], [1], [0, 0, 1, 1], [], []>} : vector<32x32xbf16>, vector<32x26xbf16>, vector<32x26xf32> -> vector<32x26xf32>
    %c0_33 = arith.constant 0 : index
    %c0_34 = arith.constant 0 : index
    %46 = vector.load %arg7[%c0_33, %c0_34] : memref<32x1xf32, #tpu.memory_space<vmem>>, vector<32x1xf32>
    %47 = vector.broadcast %46 : vector<32x1xf32> to vector<32x26xf32>
    %48 = arith.addf %45, %47 : vector<32x26xf32>
    %cst_35 = arith.constant 0.000000e+00 : f32
    %49 = vector.broadcast %cst_35 : f32 to vector<32x26xf32>
    %50 = arith.maximumf %48, %49 : vector<32x26xf32>
    %51 = vector.extract_strided_slice %21 {offsets = [0, 3], sizes = [32, 26], strides = [1, 1]} : vector<32x32xf32> to vector<32x26xf32>
    %52 = arith.addf %50, %51 : vector<32x26xf32>
    %53 = arith.truncf %52 : vector<32x26xf32> to vector<32x26xbf16>
    %c0_36 = arith.constant 0 : index
    %c0_37 = arith.constant 0 : index
    %c0_38 = arith.constant 0 : index
    %54 = vector.load %arg8[%c0_36, %c0_37, %c0_38] : memref<3x32x32xbf16, #tpu.memory_space<vmem>>, vector<1x32x32xbf16>
    %55 = vector.shape_cast %54 : vector<1x32x32xbf16> to vector<32x32xbf16>
    %56 = vector.extract_strided_slice %53 {offsets = [0, 0], sizes = [32, 8], strides = [1, 1]} : vector<32x26xbf16> to vector<32x8xbf16>
    %cst_39 = arith.constant dense<0.000000e+00> : vector<32x8xf32>
    %57 = tpu.matmul %55, %56, %cst_39 {dimension_numbers = #tpu.dot_dimension_numbers<[1], [0], [0], [1], [0, 0, 1, 1], [], []>} : vector<32x32xbf16>, vector<32x8xbf16>, vector<32x8xf32> -> vector<32x8xf32>
    %c1_40 = arith.constant 1 : index
    %c0_41 = arith.constant 0 : index
    %c0_42 = arith.constant 0 : index
    %58 = vector.load %arg8[%c1_40, %c0_41, %c0_42] : memref<3x32x32xbf16, #tpu.memory_space<vmem>>, vector<1x32x32xbf16>
    %59 = vector.shape_cast %58 : vector<1x32x32xbf16> to vector<32x32xbf16>
    %60 = vector.extract_strided_slice %53 {offsets = [0, 9], sizes = [32, 8], strides = [1, 1]} : vector<32x26xbf16> to vector<32x8xbf16>
    %cst_43 = arith.constant dense<0.000000e+00> : vector<32x8xf32>
    %61 = tpu.matmul %59, %60, %cst_43 {dimension_numbers = #tpu.dot_dimension_numbers<[1], [0], [0], [1], [0, 0, 1, 1], [], []>} : vector<32x32xbf16>, vector<32x8xbf16>, vector<32x8xf32> -> vector<32x8xf32>
    %62 = arith.addf %57, %61 : vector<32x8xf32>
    %c2_44 = arith.constant 2 : index
    %c0_45 = arith.constant 0 : index
    %c0_46 = arith.constant 0 : index
    %63 = vector.load %arg8[%c2_44, %c0_45, %c0_46] : memref<3x32x32xbf16, #tpu.memory_space<vmem>>, vector<1x32x32xbf16>
    %64 = vector.shape_cast %63 : vector<1x32x32xbf16> to vector<32x32xbf16>
    %65 = vector.extract_strided_slice %53 {offsets = [0, 18], sizes = [32, 8], strides = [1, 1]} : vector<32x26xbf16> to vector<32x8xbf16>
    %cst_47 = arith.constant dense<0.000000e+00> : vector<32x8xf32>
    %66 = tpu.matmul %64, %65, %cst_47 {dimension_numbers = #tpu.dot_dimension_numbers<[1], [0], [0], [1], [0, 0, 1, 1], [], []>} : vector<32x32xbf16>, vector<32x8xbf16>, vector<32x8xf32> -> vector<32x8xf32>
    %67 = arith.addf %62, %66 : vector<32x8xf32>
    %c0_48 = arith.constant 0 : index
    %c0_49 = arith.constant 0 : index
    %68 = vector.load %arg9[%c0_48, %c0_49] : memref<32x1xf32, #tpu.memory_space<vmem>>, vector<32x1xf32>
    %69 = vector.broadcast %68 : vector<32x1xf32> to vector<32x8xf32>
    %70 = arith.addf %67, %69 : vector<32x8xf32>
    %cst_50 = arith.constant 0.000000e+00 : f32
    %71 = vector.broadcast %cst_50 : f32 to vector<32x8xf32>
    %72 = arith.maximumf %70, %71 : vector<32x8xf32>
    %73 = arith.truncf %72 : vector<32x8xf32> to vector<32x8xbf16>
    %c0_51 = arith.constant 0 : index
    %c0_52 = arith.constant 0 : index
    %c0_53 = arith.constant 0 : index
    %74 = vector.load %arg10[%c0_51, %c0_52, %c0_53] : memref<1x32x32xbf16, #tpu.memory_space<vmem>>, vector<1x32x32xbf16>
    %75 = vector.shape_cast %74 : vector<1x32x32xbf16> to vector<32x32xbf16>
    %cst_54 = arith.constant dense<0.000000e+00> : vector<32x8xf32>
    %76 = tpu.matmul %75, %73, %cst_54 {dimension_numbers = #tpu.dot_dimension_numbers<[1], [0], [0], [1], [0, 0, 1, 1], [], []>} : vector<32x32xbf16>, vector<32x8xbf16>, vector<32x8xf32> -> vector<32x8xf32>
    %c0_55 = arith.constant 0 : index
    %c0_56 = arith.constant 0 : index
    %77 = vector.load %arg11[%c0_55, %c0_56] : memref<32x1xf32, #tpu.memory_space<vmem>>, vector<32x1xf32>
    %78 = vector.broadcast %77 : vector<32x1xf32> to vector<32x8xf32>
    %79 = arith.addf %76, %78 : vector<32x8xf32>
    %cst_57 = arith.constant 0.000000e+00 : f32
    %80 = vector.broadcast %cst_57 : f32 to vector<32x8xf32>
    %81 = arith.maximumf %79, %80 : vector<32x8xf32>
    %82 = vector.extract_strided_slice %52 {offsets = [0, 9], sizes = [32, 8], strides = [1, 1]} : vector<32x26xf32> to vector<32x8xf32>
    %83 = arith.addf %81, %82 : vector<32x8xf32>
    %c0_58 = arith.constant 0 : index
    %c0_59 = arith.constant 0 : index
    %c0_60 = arith.constant 0 : index
    %84 = vector.load %arg12[%c0_58, %c0_59, %c0_60] : memref<1x32x8xf32, #tpu.memory_space<vmem>>, vector<1x32x8xf32>
    %85 = vector.shape_cast %84 : vector<1x32x8xf32> to vector<32x8xf32>
    %86 = vector.shape_cast %83 : vector<32x8xf32> to vector<1x32x8xf32>
    tpu.vector_store %arg12[%c0_58, %c0_59, %c0_60], %86 {strides = array<i32>} : memref<1x32x8xf32, #tpu.memory_space<vmem>>, vector<1x32x8xf32>,
    return
  }
  func.func @transform_0(%arg0: i32) -> (i32, i32, i32) {
    %c0_i32 = arith.constant 0 : i32
    %c0_i32_0 = arith.constant 0 : i32
    %c0_i32_1 = arith.constant 0 : i32
    return %arg0, %c0_i32, %c0_i32_0 : i32, i32, i32
  }
  func.func @transform_1(%arg0: i32) -> (i32, i32, i32) {
    %c0_i32 = arith.constant 0 : i32
    %c0_i32_0 = arith.constant 0 : i32
    %c0_i32_1 = arith.constant 0 : i32
    %c0_i32_2 = arith.constant 0 : i32
    return %c0_i32, %c0_i32_0, %c0_i32_1 : i32, i32, i32
  }
  func.func @transform_2(%arg0: i32) -> (i32, i32) {
    %c0_i32 = arith.constant 0 : i32
    %c0_i32_0 = arith.constant 0 : i32
    %c0_i32_1 = arith.constant 0 : i32
    return %c0_i32, %c0_i32_0 : i32, i32
  }
  func.func @transform_3(%arg0: i32) -> (i32, i32, i32) {
    %c0_i32 = arith.constant 0 : i32
    %c0_i32_0 = arith.constant 0 : i32
    %c0_i32_1 = arith.constant 0 : i32
    %c0_i32_2 = arith.constant 0 : i32
    return %c0_i32, %c0_i32_0, %c0_i32_1 : i32, i32, i32
  }
  func.func @transform_4(%arg0: i32) -> (i32, i32) {
    %c0_i32 = arith.constant 0 : i32
    %c0_i32_0 = arith.constant 0 : i32
    %c0_i32_1 = arith.constant 0 : i32
    return %c0_i32, %c0_i32_0 : i32, i32
  }
  func.func @transform_5(%arg0: i32) -> (i32, i32, i32) {
    %c0_i32 = arith.constant 0 : i32
    %c0_i32_0 = arith.constant 0 : i32
    %c0_i32_1 = arith.constant 0 : i32
    %c0_i32_2 = arith.constant 0 : i32
    return %c0_i32, %c0_i32_0, %c0_i32_1 : i32, i32, i32
  }
  func.func @transform_6(%arg0: i32) -> (i32, i32) {
    %c0_i32 = arith.constant 0 : i32
    %c0_i32_0 = arith.constant 0 : i32
    %c0_i32_1 = arith.constant 0 : i32
    return %c0_i32, %c0_i32_0 : i32, i32
  }
  func.func @transform_7(%arg0: i32) -> (i32, i32, i32) {
    %c0_i32 = arith.constant 0 : i32
    %c0_i32_0 = arith.constant 0 : i32
    %c0_i32_1 = arith.constant 0 : i32
    %c0_i32_2 = arith.constant 0 : i32
    return %c0_i32, %c0_i32_0, %c0_i32_1 : i32, i32, i32
  }
  func.func @transform_8(%arg0: i32) -> (i32, i32) {
    %c0_i32 = arith.constant 0 : i32
    %c0_i32_0 = arith.constant 0 : i32
    %c0_i32_1 = arith.constant 0 : i32
    return %c0_i32, %c0_i32_0 : i32, i32
  }
  func.func @transform_9(%arg0: i32) -> (i32, i32, i32) {
    %c0_i32 = arith.constant 0 : i32
    %c0_i32_0 = arith.constant 0 : i32
    %c0_i32_1 = arith.constant 0 : i32
    %c0_i32_2 = arith.constant 0 : i32
    return %c0_i32, %c0_i32_0, %c0_i32_1 : i32, i32, i32
  }
  func.func @transform_10(%arg0: i32) -> (i32, i32) {
    %c0_i32 = arith.constant 0 : i32
    %c0_i32_0 = arith.constant 0 : i32
    %c0_i32_1 = arith.constant 0 : i32
    return %c0_i32, %c0_i32_0 : i32, i32
  }
  func.func @transform_11(%arg0: i32) -> (i32, i32, i32) {
    %c0_i32 = arith.constant 0 : i32
    %c0_i32_0 = arith.constant 0 : i32
    %c0_i32_1 = arith.constant 0 : i32
    return %arg0, %c0_i32, %c0_i32_0 : i32, i32, i32
  }
}

module attributes {stable_mosaic.version = 11 : i64} {
  func.func @_tcn_fused_kernel(%arg0: i32, %arg1: memref<1x16x34xf32, #tpu.memory_space<vmem>>, %arg2: memref<3x32x16xbf16, #tpu.memory_space<vmem>>, %arg3: memref<32x1xf32, #tpu.memory_space<vmem>>, %arg4: memref<3x32x32xbf16, #tpu.memory_space<vmem>>, %arg5: memref<32x1xf32, #tpu.memory_space<vmem>>, %arg6: memref<1x32x32xbf16, #tpu.memory_space<vmem>>, %arg7: memref<32x1xf32, #tpu.memory_space<vmem>>, %arg8: memref<3x32x32xbf16, #tpu.memory_space<vmem>>, %arg9: memref<32x1xf32, #tpu.memory_space<vmem>>, %arg10: memref<1x32x32xbf16, #tpu.memory_space<vmem>>, %arg11: memref<32x1xf32, #tpu.memory_space<vmem>>, %arg12: memref<1x32x8xf32, #tpu.memory_space<vmem>>) attributes {dimension_semantics = [#tpu.dimension_semantics<parallel>], iteration_bounds = array<i64: 2>, scalar_prefetch = 0 : i64, scratch_operands = 0 : i64, tpu.core_type = #tpu.core_type<tc>, window_params = [{transform_indices = @transform_0, window_bounds = array<i64: 1, 16, 34>}, {pipeline_mode = #tpu.pipeline_mode<synchronous>, transform_indices = @transform_1, window_bounds = array<i64: 3, 32, 16>}, {pipeline_mode = #tpu.pipeline_mode<synchronous>, transform_indices = @transform_2, window_bounds = array<i64: 32, 1>}, {pipeline_mode = #tpu.pipeline_mode<synchronous>, transform_indices = @transform_3, window_bounds = array<i64: 3, 32, 32>}, {pipeline_mode = #tpu.pipeline_mode<synchronous>, transform_indices = @transform_4, window_bounds = array<i64: 32, 1>}, {pipeline_mode = #tpu.pipeline_mode<synchronous>, transform_indices = @transform_5, window_bounds = array<i64: 1, 32, 32>}, {pipeline_mode = #tpu.pipeline_mode<synchronous>, transform_indices = @transform_6, window_bounds = array<i64: 32, 1>}, {pipeline_mode = #tpu.pipeline_mode<synchronous>, transform_indices = @transform_7, window_bounds = array<i64: 3, 32, 32>}, {pipeline_mode = #tpu.pipeline_mode<synchronous>, transform_indices = @transform_8, window_bounds = array<i64: 32, 1>}, {pipeline_mode = #tpu.pipeline_mode<synchronous>, transform_indices = @transform_9, window_bounds = array<i64: 1, 32, 32>}, {pipeline_mode = #tpu.pipeline_mode<synchronous>, transform_indices = @transform_10, window_bounds = array<i64: 32, 1>}, {transform_indices = @transform_11, window_bounds = array<i64: 1, 32, 8>}]} {
    %c0 = arith.constant 0 : index
    %c0_0 = arith.constant 0 : index
    %c0_1 = arith.constant 0 : index
    %0 = vector.load %arg1[%c0, %c0_0, %c0_1] : memref<1x16x34xf32, #tpu.memory_space<vmem>>, vector<1x16x34xf32>
    %1 = vector.shape_cast %0 : vector<1x16x34xf32> to vector<16x34xf32>
    %2 = arith.truncf %1 : vector<16x34xf32> to vector<16x34xbf16>
    %c0_2 = arith.constant 0 : index
    %c0_3 = arith.constant 0 : index
    %c0_4 = arith.constant 0 : index
    %3 = vector.load %arg2[%c0_2, %c0_3, %c0_4] : memref<3x32x16xbf16, #tpu.memory_space<vmem>>, vector<1x32x16xbf16>
    %4 = vector.shape_cast %3 : vector<1x32x16xbf16> to vector<32x16xbf16>
    %5 = vector.extract_strided_slice %2 {offsets = [0, 0], sizes = [16, 32], strides = [1, 1]} : vector<16x34xbf16> to vector<16x32xbf16>
    %cst = arith.constant dense<0.000000e+00> : vector<32x32xf32>
    %6 = tpu.matmul %4, %5, %cst {dimension_numbers = #tpu.dot_dimension_numbers<[1], [0], [0], [1], [0, 0, 1, 1], [], []>} : vector<32x16xbf16>, vector<16x32xbf16>, vector<32x32xf32> -> vector<32x32xf32>
    %c1 = arith.constant 1 : index
    %c0_5 = arith.constant 0 : index
    %c0_6 = arith.constant 0 : index
    %7 = vector.load %arg2[%c1, %c0_5, %c0_6] : memref<3x32x16xbf16, #tpu.memory_space<vmem>>, vector<1x32x16xbf16>
    %8 = vector.shape_cast %7 : vector<1x32x16xbf16> to vector<32x16xbf16>
    %9 = vector.extract_strided_slice %2 {offsets = [0, 1], sizes = [16, 32], strides = [1, 1]} : vector<16x34xbf16> to vector<16x32xbf16>
    %cst_7 = arith.constant dense<0.000000e+00> : vector<32x32xf32>
    %10 = tpu.matmul %8, %9, %cst_7 {dimension_numbers = #tpu.dot_dimension_numbers<[1], [0], [0], [1], [0, 0, 1, 1], [], []>} : vector<32x16xbf16>, vector<16x32xbf16>, vector<32x32xf32> -> vector<32x32xf32>
    %11 = arith.addf %6, %10 : vector<32x32xf32>
    %c2 = arith.constant 2 : index
    %c0_8 = arith.constant 0 : index
    %c0_9 = arith.constant 0 : index
    %12 = vector.load %arg2[%c2, %c0_8, %c0_9] : memref<3x32x16xbf16, #tpu.memory_space<vmem>>, vector<1x32x16xbf16>
    %13 = vector.shape_cast %12 : vector<1x32x16xbf16> to vector<32x16xbf16>
    %14 = vector.extract_strided_slice %2 {offsets = [0, 2], sizes = [16, 32], strides = [1, 1]} : vector<16x34xbf16> to vector<16x32xbf16>
    %cst_10 = arith.constant dense<0.000000e+00> : vector<32x32xf32>
    %15 = tpu.matmul %13, %14, %cst_10 {dimension_numbers = #tpu.dot_dimension_numbers<[1], [0], [0], [1], [0, 0, 1, 1], [], []>} : vector<32x16xbf16>, vector<16x32xbf16>, vector<32x32xf32> -> vector<32x32xf32>
    %16 = arith.addf %11, %15 : vector<32x32xf32>
    %c0_11 = arith.constant 0 : index
    %c0_12 = arith.constant 0 : index
    %17 = vector.load %arg3[%c0_11, %c0_12] : memref<32x1xf32, #tpu.memory_space<vmem>>, vector<32x1xf32>
    %18 = vector.broadcast %17 : vector<32x1xf32> to vector<32x32xf32>
    %19 = arith.addf %16, %18 : vector<32x32xf32>
    %cst_13 = arith.constant 0.000000e+00 : f32
    %20 = vector.broadcast %cst_13 : f32 to vector<32x32xf32>
    %21 = arith.maximumf %19, %20 : vector<32x32xf32>
    %22 = arith.truncf %21 : vector<32x32xf32> to vector<32x32xbf16>
    %c0_14 = arith.constant 0 : index
    %c0_15 = arith.constant 0 : index
    %c0_16 = arith.constant 0 : index
    %23 = vector.load %arg4[%c0_14, %c0_15, %c0_16] : memref<3x32x32xbf16, #tpu.memory_space<vmem>>, vector<1x32x32xbf16>
    %24 = vector.shape_cast %23 : vector<1x32x32xbf16> to vector<32x32xbf16>
    %25 = vector.extract_strided_slice %22 {offsets = [0, 0], sizes = [32, 26], strides = [1, 1]} : vector<32x32xbf16> to vector<32x26xbf16>
    %cst_17 = arith.constant dense<0.000000e+00> : vector<32x26xf32>
    %26 = tpu.matmul %24, %25, %cst_17 {dimension_numbers = #tpu.dot_dimension_numbers<[1], [0], [0], [1], [0, 0, 1, 1], [], []>} : vector<32x32xbf16>, vector<32x26xbf16>, vector<32x26xf32> -> vector<32x26xf32>
    %c1_18 = arith.constant 1 : index
    %c0_19 = arith.constant 0 : index
    %c0_20 = arith.constant 0 : index
    %27 = vector.load %arg4[%c1_18, %c0_19, %c0_20] : memref<3x32x32xbf16, #tpu.memory_space<vmem>>, vector<1x32x32xbf16>
    %28 = vector.shape_cast %27 : vector<1x32x32xbf16> to vector<32x32xbf16>
    %29 = vector.extract_strided_slice %22 {offsets = [0, 3], sizes = [32, 26], strides = [1, 1]} : vector<32x32xbf16> to vector<32x26xbf16>
    %cst_21 = arith.constant dense<0.000000e+00> : vector<32x26xf32>
    %30 = tpu.matmul %28, %29, %cst_21 {dimension_numbers = #tpu.dot_dimension_numbers<[1], [0], [0], [1], [0, 0, 1, 1], [], []>} : vector<32x32xbf16>, vector<32x26xbf16>, vector<32x26xf32> -> vector<32x26xf32>
    %31 = arith.addf %26, %30 : vector<32x26xf32>
    %c2_22 = arith.constant 2 : index
    %c0_23 = arith.constant 0 : index
    %c0_24 = arith.constant 0 : index
    %32 = vector.load %arg4[%c2_22, %c0_23, %c0_24] : memref<3x32x32xbf16, #tpu.memory_space<vmem>>, vector<1x32x32xbf16>
    %33 = vector.shape_cast %32 : vector<1x32x32xbf16> to vector<32x32xbf16>
    %34 = vector.extract_strided_slice %22 {offsets = [0, 6], sizes = [32, 26], strides = [1, 1]} : vector<32x32xbf16> to vector<32x26xbf16>
    %cst_25 = arith.constant dense<0.000000e+00> : vector<32x26xf32>
    %35 = tpu.matmul %33, %34, %cst_25 {dimension_numbers = #tpu.dot_dimension_numbers<[1], [0], [0], [1], [0, 0, 1, 1], [], []>} : vector<32x32xbf16>, vector<32x26xbf16>, vector<32x26xf32> -> vector<32x26xf32>
    %36 = arith.addf %31, %35 : vector<32x26xf32>
    %c0_26 = arith.constant 0 : index
    %c0_27 = arith.constant 0 : index
    %37 = vector.load %arg5[%c0_26, %c0_27] : memref<32x1xf32, #tpu.memory_space<vmem>>, vector<32x1xf32>
    %38 = vector.broadcast %37 : vector<32x1xf32> to vector<32x26xf32>
    %39 = arith.addf %36, %38 : vector<32x26xf32>
    %cst_28 = arith.constant 0.000000e+00 : f32
    %40 = vector.broadcast %cst_28 : f32 to vector<32x26xf32>
    %41 = arith.maximumf %39, %40 : vector<32x26xf32>
    %42 = arith.truncf %41 : vector<32x26xf32> to vector<32x26xbf16>
    %c0_29 = arith.constant 0 : index
    %c0_30 = arith.constant 0 : index
    %c0_31 = arith.constant 0 : index
    %43 = vector.load %arg6[%c0_29, %c0_30, %c0_31] : memref<1x32x32xbf16, #tpu.memory_space<vmem>>, vector<1x32x32xbf16>
    %44 = vector.shape_cast %43 : vector<1x32x32xbf16> to vector<32x32xbf16>
    %cst_32 = arith.constant dense<0.000000e+00> : vector<32x26xf32>
    %45 = tpu.matmul %44, %42, %cst_32 {dimension_numbers = #tpu.dot_dimension_numbers<[1], [0], [0], [1], [0, 0, 1, 1], [], []>} : vector<32x32xbf16>, vector<32x26xbf16>, vector<32x26xf32> -> vector<32x26xf32>
    %c0_33 = arith.constant 0 : index
    %c0_34 = arith.constant 0 : index
    %46 = vector.load %arg7[%c0_33, %c0_34] : memref<32x1xf32, #tpu.memory_space<vmem>>, vector<32x1xf32>
    %47 = vector.broadcast %46 : vector<32x1xf32> to vector<32x26xf32>
    %48 = arith.addf %45, %47 : vector<32x26xf32>
    %cst_35 = arith.constant 0.000000e+00 : f32
    %49 = vector.broadcast %cst_35 : f32 to vector<32x26xf32>
    %50 = arith.maximumf %48, %49 : vector<32x26xf32>
    %51 = vector.extract_strided_slice %21 {offsets = [0, 3], sizes = [32, 26], strides = [1, 1]} : vector<32x32xf32> to vector<32x26xf32>
    %52 = arith.addf %50, %51 : vector<32x26xf32>
    %53 = arith.truncf %52 : vector<32x26xf32> to vector<32x26xbf16>
    %c0_36 = arith.constant 0 : index
    %c0_37 = arith.constant 0 : index
    %c0_38 = arith.constant 0 : index
    %54 = vector.load %arg8[%c0_36, %c0_37, %c0_38] : memref<3x32x32xbf16, #tpu.memory_space<vmem>>, vector<1x32x32xbf16>
    %55 = vector.shape_cast %54 : vector<1x32x32xbf16> to vector<32x32xbf16>
    %56 = vector.extract_strided_slice %53 {offsets = [0, 0], sizes = [32, 8], strides = [1, 1]} : vector<32x26xbf16> to vector<32x8xbf16>
    %cst_39 = arith.constant dense<0.000000e+00> : vector<32x8xf32>
    %57 = tpu.matmul %55, %56, %cst_39 {dimension_numbers = #tpu.dot_dimension_numbers<[1], [0], [0], [1], [0, 0, 1, 1], [], []>} : vector<32x32xbf16>, vector<32x8xbf16>, vector<32x8xf32> -> vector<32x8xf32>
    %c1_40 = arith.constant 1 : index
    %c0_41 = arith.constant 0 : index
    %c0_42 = arith.constant 0 : index
    %58 = vector.load %arg8[%c1_40, %c0_41, %c0_42] : memref<3x32x32xbf16, #tpu.memory_space<vmem>>, vector<1x32x32xbf16>
    %59 = vector.shape_cast %58 : vector<1x32x32xbf16> to vector<32x32xbf16>
    %60 = vector.extract_strided_slice %53 {offsets = [0, 9], sizes = [32, 8], strides = [1, 1]} : vector<32x26xbf16> to vector<32x8xbf16>
    %cst_43 = arith.constant dense<0.000000e+00> : vector<32x8xf32>
    %61 = tpu.matmul %59, %60, %cst_43 {dimension_numbers = #tpu.dot_dimension_numbers<[1], [0], [0], [1], [0, 0, 1, 1], [], []>} : vector<32x32xbf16>, vector<32x8xbf16>, vector<32x8xf32> -> vector<32x8xf32>
    %62 = arith.addf %57, %61 : vector<32x8xf32>
    %c2_44 = arith.constant 2 : index
    %c0_45 = arith.constant 0 : index
    %c0_46 = arith.constant 0 : index
    %63 = vector.load %arg8[%c2_44, %c0_45, %c0_46] : memref<3x32x32xbf16, #tpu.memory_space<vmem>>, vector<1x32x32xbf16>
    %64 = vector.shape_cast %63 : vector<1x32x32xbf16> to vector<32x32xbf16>
    %65 = vector.extract_strided_slice %53 {offsets = [0, 18], sizes = [32, 8], strides = [1, 1]} : vector<32x26xbf16> to vector<32x8xbf16>
    %cst_47 = arith.constant dense<0.000000e+00> : vector<32x8xf32>
    %66 = tpu.matmul %64, %65, %cst_47 {dimension_numbers = #tpu.dot_dimension_numbers<[1], [0], [0], [1], [0, 0, 1, 1], [], []>} : vector<32x32xbf16>, vector<32x8xbf16>, vector<32x8xf32> -> vector<32x8xf32>
    %67 = arith.addf %62, %66 : vector<32x8xf32>
    %c0_48 = arith.constant 0 : index
    %c0_49 = arith.constant 0 : index
    %68 = vector.load %arg9[%c0_48, %c0_49] : memref<32x1xf32, #tpu.memory_space<vmem>>, vector<32x1xf32>
    %69 = vector.broadcast %68 : vector<32x1xf32> to vector<32x8xf32>
    %70 = arith.addf %67, %69 : vector<32x8xf32>
    %cst_50 = arith.constant 0.000000e+00 : f32
    %71 = vector.broadcast %cst_50 : f32 to vector<32x8xf32>
    %72 = arith.maximumf %70, %71 : vector<32x8xf32>
    %73 = arith.truncf %72 : vector<32x8xf32> to vector<32x8xbf16>
    %c0_51 = arith.constant 0 : index
    %c0_52 = arith.constant 0 : index
    %c0_53 = arith.constant 0 : index
    %74 = vector.load %arg10[%c0_51, %c0_52, %c0_53] : memref<1x32x32xbf16, #tpu.memory_space<vmem>>, vector<1x32x32xbf16>
    %75 = vector.shape_cast %74 : vector<1x32x32xbf16> to vector<32x32xbf16>
    %cst_54 = arith.constant dense<0.000000e+00> : vector<32x8xf32>
    %76 = tpu.matmul %75, %73, %cst_54 {dimension_numbers = #tpu.dot_dimension_numbers<[1], [0], [0], [1], [0, 0, 1, 1], [], []>} : vector<32x32xbf16>, vector<32x8xbf16>, vector<32x8xf32> -> vector<32x8xf32>
    %c0_55 = arith.constant 0 : index
    %c0_56 = arith.constant 0 : index
    %77 = vector.load %arg11[%c0_55, %c0_56] : memref<32x1xf32, #tpu.memory_space<vmem>>, vector<32x1xf32>
    %78 = vector.broadcast %77 : vector<32x1xf32> to vector<32x8xf32>
    %79 = arith.addf %76, %78 : vector<32x8xf32>
    %cst_57 = arith.constant 0.000000e+00 : f32
    %80 = vector.broadcast %cst_57 : f32 to vector<32x8xf32>
    %81 = arith.maximumf %79, %80 : vector<32x8xf32>
    %82 = vector.extract_strided_slice %52 {offsets = [0, 9], sizes = [32, 8], strides = [1, 1]} : vector<32x26xf32> to vector<32x8xf32>
    %83 = arith.addf %81, %82 : vector<32x8xf32>
    %c0_58 = arith.constant 0 : index
    %c0_59 = arith.constant 0 : index
    %c0_60 = arith.constant 0 : index
    %84 = vector.load %arg12[%c0_58, %c0_59, %c0_60] : memref<1x32x8xf32, #tpu.memory_space<vmem>>, vector<1x32x8xf32>
    %85 = vector.shape_cast %84 : vector<1x32x8xf32> to vector<32x8xf32>
    %86 = vector.shape_cast %83 : vector<32x8xf32> to vector<1x32x8xf32>
    tpu.vector_store %arg12[%c0_58, %c0_59, %c0_60], %86 {strides = array<i32>} : memref<1x32x8xf32, #tpu.memory_space<vmem>>, vector<1x32x8xf32>,
    return
  }
  func.func @transform_0(%arg0: i32) -> (i32, i32, i32) {
    %c0_i32 = arith.constant 0 : i32
    %c0_i32_0 = arith.constant 0 : i32
    %c0_i32_1 = arith.constant 0 : i32
    return %arg0, %c0_i32, %c0_i32_0 : i32, i32, i32
  }
  func.func @transform_1(%arg0: i32) -> (i32, i32, i32) {
    %c0_i32 = arith.constant 0 : i32
    %c0_i32_0 = arith.constant 0 : i32
    %c0_i32_1 = arith.constant 0 : i32
    %c0_i32_2 = arith.constant 0 : i32
    return %c0_i32, %c0_i32_0, %c0_i32_1 : i32, i32, i32
  }
  func.func @transform_2(%arg0: i32) -> (i32, i32) {
    %c0_i32 = arith.constant 0 : i32
    %c0_i32_0 = arith.constant 0 : i32
    %c0_i32_1 = arith.constant 0 : i32
    return %c0_i32, %c0_i32_0 : i32, i32
  }
  func.func @transform_3(%arg0: i32) -> (i32, i32, i32) {
    %c0_i32 = arith.constant 0 : i32
    %c0_i32_0 = arith.constant 0 : i32
    %c0_i32_1 = arith.constant 0 : i32
    %c0_i32_2 = arith.constant 0 : i32
    return %c0_i32, %c0_i32_0, %c0_i32_1 : i32, i32, i32
  }
  func.func @transform_4(%arg0: i32) -> (i32, i32) {
    %c0_i32 = arith.constant 0 : i32
    %c0_i32_0 = arith.constant 0 : i32
    %c0_i32_1 = arith.constant 0 : i32
    return %c0_i32, %c0_i32_0 : i32, i32
  }
  func.func @transform_5(%arg0: i32) -> (i32, i32, i32) {
    %c0_i32 = arith.constant 0 : i32
    %c0_i32_0 = arith.constant 0 : i32
    %c0_i32_1 = arith.constant 0 : i32
    %c0_i32_2 = arith.constant 0 : i32
    return %c0_i32, %c0_i32_0, %c0_i32_1 : i32, i32, i32
  }
  func.func @transform_6(%arg0: i32) -> (i32, i32) {
    %c0_i32 = arith.constant 0 : i32
    %c0_i32_0 = arith.constant 0 : i32
    %c0_i32_1 = arith.constant 0 : i32
    return %c0_i32, %c0_i32_0 : i32, i32
  }
  func.func @transform_7(%arg0: i32) -> (i32, i32, i32) {
    %c0_i32 = arith.constant 0 : i32
    %c0_i32_0 = arith.constant 0 : i32
    %c0_i32_1 = arith.constant 0 : i32
    %c0_i32_2 = arith.constant 0 : i32
    return %c0_i32, %c0_i32_0, %c0_i32_1 : i32, i32, i32
  }
  func.func @transform_8(%arg0: i32) -> (i32, i32) {
    %c0_i32 = arith.constant 0 : i32
    %c0_i32_0 = arith.constant 0 : i32
    %c0_i32_1 = arith.constant 0 : i32
    return %c0_i32, %c0_i32_0 : i32, i32
  }
  func.func @transform_9(%arg0: i32) -> (i32, i32, i32) {
    %c0_i32 = arith.constant 0 : i32
    %c0_i32_0 = arith.constant 0 : i32
    %c0_i32_1 = arith.constant 0 : i32
    %c0_i32_2 = arith.constant 0 : i32
    return %c0_i32, %c0_i32_0, %c0_i32_1 : i32, i32, i32
  }
  func.func @transform_10(%arg0: i32) -> (i32, i32) {
    %c0_i32 = arith.constant 0 : i32
    %c0_i32_0 = arith.constant 0 : i32
    %c0_i32_1 = arith.constant 0 : i32
    return %c0_i32, %c0_i32_0 : i32, i32
  }
  func.func @transform_11(%arg0: i32) -> (i32, i32, i32) {
    %c0_i32 = arith.constant 0 : i32
    %c0_i32_0 = arith.constant 0 : i32
    %c0_i32_1 = arith.constant 0 : i32
    return %arg0, %c0_i32, %c0_i32_0 : i32, i32, i32
  }
}

</mosaic_0001>

<bundles_post_ra>
// kernel: tpu_custom_call.1
= control target key start
LH: loop header
LB: loop body
LE: loop exit
PB: predicated region body
PF: predicated region fallthrough
CT: control target
= control target key end

     0   :  { %s1807_s17 = smov 0   ;;  %s1982_s0 = inlined_call_operand.vmem [shape: f32[2,16,34], index: 0, kind: input, shape index: {}]   ;;  %s1983_s1 = inlined_call_operand.vmem [shape: bf16[3,32,16], index: 1, kind: input, shape index: {}]   ;;  %s1984_s2 = inlined_call_operand.vmem [shape: f32[32,1], index: 2, kind: input, shape index: {}]   ;;  %s1985_s3 = inlined_call_operand.vmem [shape: bf16[3,32,32], index: 3, kind: input, shape index: {}]   ;;  %s1986_s4 = inlined_call_operand.vmem [shape: f32[32,1], index: 4, kind: input, shape index: {}]   ;;  %s1987_s5 = inlined_call_operand.vmem [shape: bf16[1,32,32], index: 5, kind: input, shape index: {}]   ;;  %s1988_s6 = inlined_call_operand.vmem [shape: f32[32,1], index: 6, kind: input, shape index: {}]   ;;  %s1989_s7 = inlined_call_operand.vmem [shape: bf16[3,32,32], index: 7, kind: input, shape index: {}]   ;;  %s1990_s8 = inlined_call_operand.vmem [shape: f32[32,1], index: 8, kind: input, shape index: {}]   ;;  %s1991_s9 = inlined_call_operand.vmem [shape: bf16[1,32,32], index: 9, kind: input, shape index: {}]   ;;  %s1992_s10 = inlined_call_operand.vmem [shape: f32[32,1], index: 10, kind: input, shape index: {}]   ;;  %s1993_s11 = inlined_call_operand.vmem [shape: f32[2,32,8], index: 11, kind: output, shape index: {}]  }
   0x1 LB: > { %s1465_s18 = sadd.s32 4294967295, %s1738_s17   ;;  %p1469_p0 = scmp.ge.s32.totalorder %s1738_s17, 1  ;;  %s1738_s17 = sphi %s1807_s17, %s21_s17  }
   0x2   : > { %p337_p1 = scmp.lt.s32.totalorder %s1738_s17, 3 }
   0x4   : > { %p338_p2 = pnand %p1469_p0, %p337_p1 }
   0x5   : > { %p377_p3 = scmp.lt.s32.totalorder (!%p338_p2), %s1465_s18, 1  ;;  %v1710_v0 = vld [vmem:[%s1983_s1 + $0x10] sm:$0xff] (!%p338_p2)   ;;  %vm414_vm0 = vcmask (!%p338_p2), 130048   ;;  %s1740_s25 = smov (!%p338_p2), 127   ;;  %v612_v4 = vld [vmem:[%s1984_s2] sm:$0xff] (!%p338_p2)  ;;  %v1742_v5 = vmov (!%p338_p2), 0  }
   0x6   : > { %341 = sbr.rel (%p338_p2) target bundleno = 1558 (0x616), region = 64  ;;  %1589 = vmatprep.mubr.msk.bf16.mxu0 (!%p338_p2), %vm414_vm0, %v1710_v0  ;;  %s1741_s26 = smov (!%p338_p2), 126   ;;  %1708 = vset.pattern.permute.xlu1 (!%p338_p2), %v1742_v5  ;;  %v614_v6 = vld [vmem:[%s1984_s2 + $0x10] sm:$0xff] (!%p338_p2)  ;;  %v613_v7 = vld [vmem:[%s1984_s2 + $0x8] sm:$0xff] (!%p338_p2)  ;;  %v615_v8 = vld [vmem:[%s1984_s2 + $0x18] sm:$0xff] (!%p338_p2)  ;;  %vm673_vm1 = vcmask (!%p338_p2), 261120  }
   0x7   : > { %1709 = vset.pattern.permute.xlu0 (!%p338_p2), %v1742_v5  ;;  %618 = vperm.xlu1 (!%p338_p2), %1708, %v612_v4   ;;  %v1711_v10 = vld [vmem:[%s1983_s1 + $0x18] sm:$0xff] (!%p338_p2)   ;;  %v1712_v11 = vld [vmem:[%s1983_s1] sm:$0xff] (!%p338_p2)   ;;  %v1713_v13 = vld [vmem:[%s1983_s1 + $0x8] sm:$0xff] (!%p338_p2)   ;;  %s1743_s13 = smov (!%p338_p2), 122   ;;  %s1744_s14 = smov (!%p338_p2), 125   ;;  %vm1405_vm2 = vcmask (!%p338_p2), 64512  }
   0x8   : > { %v1714_v14 = vld [vmem:[%s1983_s1 + $0x20] sm:$0xff] (!%p338_p2)   ;;  %v1715_v15 = vld [vmem:[%s1983_s1 + $0x28] sm:$0xff] (!%p338_p2)   ;;  %v1718_v26 = vld [vmem:[%s1985_s3 + $0x10] sm:$0xff] (!%p338_p2)   ;;  %s1745_s30 = smov (!%p338_p2), 119   ;;  %s1746_s12 = smov (!%p338_p2), 110  }
   0x9   : > { %v1716_v16 = vld [vmem:[%s1985_s3] sm:$0xff] (!%p338_p2)   ;;  %v875_v36 = vld [vmem:[%s1986_s4 + $0x8] sm:$0xff] (!%p338_p2)  ;;  %v877_v40 = vld [vmem:[%s1986_s4 + $0x18] sm:$0xff] (!%p338_p2) }
   0xa   : > { %1617 = vmatprep.mubr.msk.bf16.mxu1 (!%p338_p2), %vm673_vm1, %v1716_v16  ;;  %v874_v37 = vld [vmem:[%s1986_s4] sm:$0xff] (!%p338_p2)  ;;  %v1717_v38 = vld [vmem:[%s1985_s3 + $0x8] sm:$0xff] (!%p338_p2)   ;;  %v876_v41 = vld [vmem:[%s1986_s4 + $0x10] sm:$0xff] (!%p338_p2) }
   0xb   : > { %623 = vperm.xlu1 (!%p338_p2), %1708, %v613_v7   ;;  %v1719_v39 = vld [vmem:[%s1985_s3 + $0x20] sm:$0xff] (!%p338_p2)   ;;  %v913_v42 = vld [vmem:[%s1988_s6 + $0x8] sm:$0xff] (!%p338_p2)  ;;  %v915_v44 = vld [vmem:[%s1988_s6 + $0x18] sm:$0xff] (!%p338_p2) }
   0xc   : > { %v912_v43 = vld [vmem:[%s1988_s6] sm:$0xff] (!%p338_p2)  ;;  %v914_v45 = vld [vmem:[%s1988_s6 + $0x10] sm:$0xff] (!%p338_p2)  ;;  %v1720_v50 = vld [vmem:[%s1985_s3 + $0x18] sm:$0xff] (!%p338_p2)  }
   0xd   : > { %s1995_s18 = smov (!%p377_p3, %s1465_s18), 1  ;;  %v1721_v51 = vld [vmem:[%s1985_s3 + $0x28] sm:$0xff]   ;;  %v1722_v52 = vld [vmem:[%s1987_s5] sm:$0xff]  }
   0xe   : > { %s1544_s21 = sshll.u32 %s1995_s18, 4  ;;  %s1545_s28 = sshll.u32 %s1995_s18, 5 }
   0xf   : > { %s381_s24 = scalar_lea.vmem %s1982_s0, %s1544_s21  ;;  %633 = vperm.xlu1 %1708, %v615_v8  }
  0x10   : > { %v388_v1 = vld [vmem:[%s381_s24] sm:$0xff]  ;;  %v389_v2 = vld [vmem:[%s381_s24 + $0x8] sm:$0xff] }
  0x11   : > { %v390_v3 = vpack.c.bf16 %v389_v2, %v388_v1 }
  0x13   : > { %411 = vrot.lane.b32.xlu0 %v390_v3, %s1740_s25 }
  0x17   : > { %550 = vrot.lane.b32.xlu0 %v390_v3, %s1741_s26 }
  0x1b   : > { %628 = vperm.xlu0 %1709, %v614_v6  }
  0x85   : > { %v412_v9 = vpop.permute.xlu0 %411 }
  0x86   : > { %1587 = vmatprep.subr.bf16.mxu0 %v412_v9  ;;  %v619_v17 = vpop.permute.xlu1 %618 }
  0x87   : > { %1588 = vmatpush3.bf16.msra.mxu0 %v412_v9 }
  0x88   : > { %1593 = vmatprep.subr.bf16.mxu0 %v390_v3 }
  0x89   : > { %v551_v12 = vpop.permute.xlu0 %550 }
  0x8a   : > { %1590 = vmatmul.mubr.msk.bf16.vlgmr.msra.gmra.mrb[0].mxu0 %vm414_vm0, %v1711_v10  ;;  %v624_v18 = vpop.permute.xlu1 %623 }
  0x8b   : > { %1594 = vmatpush3.bf16.msra.mxu0 %v390_v3  ;;  %1595 = vmatprep.mubr.msk.bf16.mxu0 %vm414_vm0, %v1712_v11 }
  0x8c   : > { %1599 = vmatprep.subr.bf16.mxu0 %v551_v12 }
  0x8e   : > { %v634_v23 = vpop.permute.xlu1 %633 }
  0x96   : > { %1596 = vmatmul.mubr.msk.bf16.vlgmr.msra.gmra.mrb[0].mxu0 %vm414_vm0, %v1713_v13 }
  0x97   : > { %1600 = vmatpush3.bf16.msra.mxu0 %v551_v12  ;;  %1601 = vmatprep.mubr.msk.bf16.mxu0 %vm414_vm0, %v1714_v14 }
  0x9a   : > { %v629_v19 = vpop.permute.xlu0 %628 }
  0xa2   : > { %1602 = vmatmul.mubr.msk.bf16.vlgmr.msra.gmra.mrb[0].mxu0 %vm414_vm0, %v1715_v15  ;;  %v1723_v15 = vld [vmem:[%s1987_s5 + $0x8] sm:$0xff]  }
  0xa3   : > { %1609 = vmatprep.mubr.msk.bf16.mxu0 %vm673_vm1, %v1718_v26 }
 0x175   : > { %v1603_v20 = vpop.f32.mrb[0].mxu0 }
 0x176   : > { %v638_v21 = vadd.f32 %v1603_v20, %v629_v19  ;;  %v593_v22 = vpop.f32.mrb[1].mxu0 }
 0x177   : > { %v636_v24 = vadd.f32 %v619_v17, %v593_v22  ;;  %v1604_v25 = vpop.f32.mrb[2].mxu0 }
 0x178   : > { %v639_v27 = vadd.f32 %v1604_v25, %v634_v23  ;;  %v596_v28 = vpop.f32.mrb[3].mxu0  ;;  %v642_v30 = vmax.f32 %v638_v21, 0.0 }
 0x179   : > { %v637_v29 = vadd.f32 %v624_v18, %v596_v28  ;;  %v640_v32 = vmax.f32 %v636_v24, 0.0 }
 0x17a   : > { %v643_v31 = vmax.f32 %v639_v27, 0.0 }
 0x17b   : > { %v641_v33 = vmax.f32 %v637_v29, 0.0 }
 0x17c   : > { %v645_v34 = vpack.c.bf16 %v643_v31, %v642_v30 }
 0x17d   : > { %v644_v35 = vpack.c.bf16 %v641_v33, %v640_v32 }
 0x17f   : > { %809 = vrot.lane.b32.xlu0 %v644_v35, %s1743_s13  ;;  %667 = vrot.lane.b32.xlu1 %v644_v35, %s1744_s14 }
 0x180   : > { %1613 = vmatprep.subr.bf16.mxu1 %v644_v35 }
 0x181   : > { %1614 = vmatpush3.bf16.msra.mxu1 %v644_v35 }
 0x182   : > { %1615 = vmatprep.subr.bf16.mxu1 %v645_v34 }
 0x183   : > { %811 = vrot.lane.b32.xlu0 %v645_v34, %s1743_s13  ;;  %669 = vrot.lane.b32.xlu1 %v645_v34, %s1744_s14  ;;  %s386_s13 = scalar_lea.vmem %s1993_s11, %s1545_s28 }
 0x185   : > { %1616 = vmatpush3.bf16.msra.mxu1 %v645_v34 }
 0x187   : > { %885 = vperm.xlu0 %1709, %v875_v36   ;;  %880 = vperm.xlu1 %1708, %v874_v37  }
 0x188   : > { %1618 = vmatmul.mubr.msk.bf16.vlgmr.msra.gmra.mrb[0].mxu1 %vm673_vm1, %v1717_v38 }
 0x189   : > { %1625 = vmatprep.mubr.msk.bf16.mxu1 %vm673_vm1, %v1719_v39 }
 0x18b   : > { %895 = vperm.xlu0 %1709, %v877_v40   ;;  %890 = vperm.xlu1 %1708, %v876_v41  }
 0x18f   : > { %923 = vperm.xlu0 %1709, %v913_v42   ;;  %918 = vperm.xlu1 %1708, %v912_v43   ;;  %v1255_v43 = vld [vmem:[%s1990_s8 + $0x8] sm:$0xff] }
 0x193   : > { %933 = vperm.xlu0 %1709, %v915_v44   ;;  %928 = vperm.xlu1 %1708, %v914_v45   ;;  %v1254_v44 = vld [vmem:[%s1990_s8] sm:$0xff]  ;;  %v1257_v45 = vld [vmem:[%s1990_s8 + $0x18] sm:$0xff] }
 0x197   : > { %1011 = vrot.lane.b32.xlu0 %v641_v33, %s1744_s14  ;;  %1009 = vrot.lane.b32.xlu1 %v640_v32, %s1744_s14  ;;  %v1724_v33 = vld [vmem:[%s1989_s7 + $0x10] sm:$0xff]  }
 0x19b   : > { %1015 = vrot.lane.b32.xlu0 %v643_v31, %s1744_s14  ;;  %1013 = vrot.lane.b32.xlu1 %v642_v30, %s1744_s14 }
 0x1f1   : > { %v668_v46 = vpop.permute.xlu1 %667  ;;  %v810_v47 = vpop.permute.xlu0 %809 }
 0x1f2   : > { %1605 = vmatprep.subr.bf16.mxu0 %v668_v46  ;;  %1621 = vmatprep.subr.bf16.mxu1 %v810_v47 }
 0x1f3   : > { %1606 = vmatpush3.bf16.msra.mxu0 %v668_v46  ;;  %1622 = vmatpush3.bf16.msra.mxu1 %v810_v47  ;;  %v1256_v46 = vld [vmem:[%s1990_s8 + $0x10] sm:$0xff]  ;;  %v1293_v47 = vld [vmem:[%s1992_s10 + $0x8] sm:$0xff] }
 0x1f5   : > { %v670_v48 = vpop.permute.xlu1 %669  ;;  %v812_v49 = vpop.permute.xlu0 %811 }
 0x1f6   : > { %1607 = vmatprep.subr.bf16.mxu0 %v670_v48  ;;  %1623 = vmatprep.subr.bf16.mxu1 %v812_v49 }
 0x1f7   : > { %1608 = vmatpush3.bf16.msra.mxu0 %v670_v48  ;;  %1624 = vmatpush3.bf16.msra.mxu1 %v812_v49  ;;  %v1292_v48 = vld [vmem:[%s1992_s10] sm:$0xff]  ;;  %v1295_v49 = vld [vmem:[%s1992_s10 + $0x18] sm:$0xff] }
 0x1fa   : > { %1610 = vmatmul.mubr.msk.bf16.vlgmr.msra.gmra.mrb[4].mxu0 %vm673_vm1, %v1720_v50  ;;  %1626 = vmatmul.mubr.msk.bf16.vlgmr.msra.gmra.mrb[0].mxu1 %vm673_vm1, %v1721_v51  ;;  %v1294_v50 = vld [vmem:[%s1992_s10 + $0x10] sm:$0xff] }
 0x1fb   : > { %1633 = vmatprep.mubr.msk.bf16.mxu0 %vm673_vm1, %v1722_v52  ;;  %1641 = vmatprep.mubr.msk.bf16.mxu1 %vm673_vm1, %v1724_v33 }
 0x206   : > { %v881_v53 = vpop.permute.xlu1 %880  ;;  %v886_v54 = vpop.permute.xlu0 %885 }
 0x20a   : > { %v891_v55 = vpop.permute.xlu1 %890  ;;  %v896_v4 = vpop.permute.xlu0 %895 }
 0x20e   : > { %v919_v16 = vpop.permute.xlu1 %918  ;;  %v924_v17 = vpop.permute.xlu0 %923 }
 0x212   : > { %v929_v18 = vpop.permute.xlu1 %928  ;;  %v934_v19 = vpop.permute.xlu0 %933 }
 0x216   : > { %v1010_v20 = vpop.permute.xlu1 %1009  ;;  %v1012_v21 = vpop.permute.xlu0 %1011 }
 0x21a   : > { %v1014_v34 = vpop.permute.xlu1 %1013  ;;  %v1016_v35 = vpop.permute.xlu0 %1015 }
 0x2cd   : > { %v1611_v56 = vpop.f32.mrb[4].mxu0  ;;  %v1627_v57 = vpop.f32.mrb[0].mxu1 }
 0x2ce   : > { %v1669_v58 = vadd.f32 %v1627_v57, %v1611_v56  ;;  %v714_v59 = vpop.f32.mrb[5].mxu0  ;;  %v855_v60 = vpop.f32.mrb[1].mxu1  ;;  %v1727_v56 = vld [vmem:[%s1989_s7 + $0x8] sm:$0xff]   ;;  %v1728_v57 = vld [vmem:[%s1989_s7 + $0x20] sm:$0xff]  }
 0x2cf   : > { %v1670_v61 = vadd.f32 %v855_v60, %v714_v59  ;;  %v1612_v62 = vpop.f32.mrb[6].mxu0  ;;  %v1628_v63 = vpop.f32.mrb[2].mxu1  ;;  %v1729_v59 = vld [vmem:[%s1989_s7 + $0x28] sm:$0xff]   ;;  %v1730_v60 = vld [vmem:[%s1991_s9] sm:$0xff]  }
 0x2d0   : > { %v900_v0 = vadd.f32 %v1669_v58, %v891_v55  ;;  %v1671_v1 = vadd.f32 %v1628_v63, %v1612_v62  ;;  %v717_v2 = vpop.f32.mrb[7].mxu0  ;;  %v858_v3 = vpop.f32.mrb[3].mxu1 }
 0x2d1   : > { %v898_v5 = vadd.f32 %v1670_v61, %v881_v53  ;;  %v1672_v6 = vadd.f32 %v858_v3, %v717_v2  ;;  %v1725_v53 = vld [vmem:[%s1989_s7 + $0x18] sm:$0xff]  }
 0x2d2   : > { %v901_v7 = vadd.f32 %v1671_v1, %v896_v4  ;;  %v904_v9 = vmax.f32 %v900_v0, 0.0 }
 0x2d3   : > { %v899_v8 = vadd.f32 %v1672_v6, %v886_v54  ;;  %v902_v11 = vmax.f32 %v898_v5, 0.0  ;;  %v1726_v54 = vld [vmem:[%s1989_s7] sm:$0xff]  }
 0x2d4   : > { %v905_v10 = vmax.f32 %v901_v7, 0.0 }
 0x2d5   : > { %v903_v12 = vmax.f32 %v899_v8, 0.0 }
 0x2d6   : > { %v907_v13 = vpack.c.bf16 %v905_v10, %v904_v9 }
 0x2d7   : > { %v906_v14 = vpack.c.bf16 %v903_v12, %v902_v11 }
 0x2d9   : > { %1629 = vmatprep.subr.bf16.mxu0 %v906_v14 }
 0x2da   : > { %1630 = vmatpush3.bf16.msra.mxu0 %v906_v14 }
 0x2db   : > { %1631 = vmatprep.subr.bf16.mxu0 %v907_v13 }
 0x2de   : > { %1632 = vmatpush3.bf16.msra.mxu0 %v907_v13 }
 0x2e1   : > { %1634 = vmatmul.mubr.msk.bf16.vlgmr.msra.gmra.mrb[8].mxu0 %vm673_vm1, %v1723_v15  ;;  %v1731_v15 = vld [vmem:[%s1991_s9 + $0x8] sm:$0xff]  }
 0x2e2   : > { %1665 = vmatprep.mubr.msk.bf16.mxu0 %vm673_vm1, %v1730_v60 }
 0x3b4   : > { %v1635_v22 = vpop.f32.mrb[8].mxu0 }
 0x3b5   : > { %v995_v23 = vadd.f32 %v1635_v22, %v929_v18  ;;  %v986_v24 = vpop.f32.mrb[9].mxu0 }
 0x3b6   : > { %v987_v25 = vadd.f32 %v986_v24, %v919_v16  ;;  %v1636_v26 = vpop.f32.mrb[10].mxu0 }
 0x3b7   : > { %v1003_v27 = vmax.f32 %v995_v23, 0.0  ;;  %v998_v28 = vadd.f32 %v1636_v26, %v934_v19  ;;  %v989_v29 = vpop.f32.mrb[11].mxu0 }
 0x3b8   : > { %v1001_v30 = vmax.f32 %v987_v25, 0.0  ;;  %v990_v31 = vadd.f32 %v989_v29, %v924_v17 }
 0x3b9   : > { %v1004_v32 = vmax.f32 %v998_v28, 0.0  ;;  %v1023_v37 = vadd.f32 %v1014_v34, %v1003_v27 }
 0x3ba   : > { %v1002_v36 = vmax.f32 %v990_v31, 0.0  ;;  %v1021_v39 = vadd.f32 %v1010_v20, %v1001_v30 }
 0x3bb   : > { %v1024_v38 = vadd.f32 %v1016_v35, %v1004_v32 }
 0x3bc   : > { %v1022_v40 = vadd.f32 %v1012_v21, %v1002_v36 }
 0x3bd   : > { %v1026_v41 = vpack.c.bf16 %v1024_v38, %v1023_v37 }
 0x3be   : > { %v1025_v42 = vpack.c.bf16 %v1022_v40, %v1021_v39 }
 0x3bf   : > { %1050 = vrot.lane.b32.xlu0 %v1026_v41, %s1745_s30 }
 0x3c0   : > { %1048 = vrot.lane.b32.xlu1 %v1025_v42, %s1745_s30 }
 0x3c3   : > { %1191 = vrot.lane.b32.xlu0 %v1026_v41, %s1746_s12 }
 0x3c4   : > { %1189 = vrot.lane.b32.xlu1 %v1025_v42, %s1746_s12 }
 0x3c7   : > { %1265 = vperm.xlu0 %1709, %v1255_v43  }
 0x3c8   : > { %1260 = vperm.xlu1 %1708, %v1254_v44  }
 0x3cb   : > { %1275 = vperm.xlu0 %1709, %v1257_v45  }
 0x3cc   : > { %1270 = vperm.xlu1 %1708, %v1256_v46  }
 0x3cf   : > { %1303 = vperm.xlu0 %1709, %v1293_v47  }
 0x3d0   : > { %1298 = vperm.xlu1 %1708, %v1292_v48  }
 0x3d3   : > { %1313 = vperm.xlu0 %1709, %v1295_v49  }
 0x3d4   : > { %1308 = vperm.xlu1 %1708, %v1294_v50  }
 0x3d7   : > { %1391 = vrot.lane.b32.xlu0 %v1022_v40, %s1745_s30 }
 0x3d8   : > { %1389 = vrot.lane.b32.xlu1 %v1021_v39, %s1745_s30 }
 0x3db   : > { %1395 = vrot.lane.b32.xlu0 %v1024_v38, %s1745_s30 }
 0x3dc   : > { %1393 = vrot.lane.b32.xlu1 %v1023_v37, %s1745_s30 }
 0x431   : > { %v1051_v52 = vpop.permute.xlu0 %1050 }
 0x432   : > { %v1049_v51 = vpop.permute.xlu1 %1048 }
 0x433   : > { %1637 = vmatprep.subr.bf16.mxu1 %v1049_v51 }
 0x434   : > { %1638 = vmatpush3.bf16.msra.mxu1 %v1049_v51 }
 0x435   : > { %1639 = vmatprep.subr.bf16.mxu1 %v1051_v52  ;;  %v1192_v58 = vpop.permute.xlu0 %1191 }
 0x436   : > { %v1190_v55 = vpop.permute.xlu1 %1189 }
 0x438   : > { %1640 = vmatpush3.bf16.msra.mxu1 %v1051_v52 }
 0x439   : > { %1645 = vmatprep.subr.bf16.mxu1 %v1025_v42 }
 0x43b   : > { %1642 = vmatmul.mubr.msk.bf16.vlgmr.msra.gmra.mrb[4].mxu1 %vm673_vm1, %v1725_v53 }
 0x43c   : > { %1646 = vmatpush3.bf16.msra.mxu1 %v1025_v42  ;;  %1649 = vmatprep.mubr.msk.bf16.mxu1 %vm673_vm1, %v1726_v54 }
 0x43d   : > { %1647 = vmatprep.subr.bf16.mxu1 %v1026_v41 }
 0x440   : > { %1648 = vmatpush3.bf16.msra.mxu1 %v1026_v41 }
 0x441   : > { %1653 = vmatprep.subr.bf16.mxu1 %v1190_v55 }
 0x446   : > { %v1266_v62 = vpop.permute.xlu0 %1265 }
 0x447   : > { %1650 = vmatmul.mubr.msk.bf16.vlgmr.msra.gmra.mrb[4].mxu1 %vm673_vm1, %v1727_v56  ;;  %v1261_v61 = vpop.permute.xlu1 %1260 }
 0x448   : > { %1654 = vmatpush3.bf16.msra.mxu1 %v1190_v55  ;;  %1657 = vmatprep.mubr.msk.bf16.mxu1 %vm673_vm1, %v1728_v57 }
 0x449   : > { %1655 = vmatprep.subr.bf16.mxu1 %v1192_v58 }
 0x44a   : > { %v1276_v3 = vpop.permute.xlu0 %1275 }
 0x44b   : > { %v1271_v63 = vpop.permute.xlu1 %1270 }
 0x44c   : > { %1656 = vmatpush3.bf16.msra.mxu1 %v1192_v58 }
 0x44e   : > { %v1304_v17 = vpop.permute.xlu0 %1303 }
 0x44f   : > { %v1299_v16 = vpop.permute.xlu1 %1298 }
 0x452   : > { %v1314_v19 = vpop.permute.xlu0 %1313 }
 0x453   : > { %1658 = vmatmul.mubr.msk.bf16.vlgmr.msra.gmra.mrb[4].mxu1 %vm673_vm1, %v1729_v59  ;;  %v1309_v18 = vpop.permute.xlu1 %1308 }
 0x456   : > { %v1392_v21 = vpop.permute.xlu0 %1391 }
 0x457   : > { %v1390_v20 = vpop.permute.xlu1 %1389 }
 0x45a   : > { %v1396_v35 = vpop.permute.xlu0 %1395 }
 0x45b   : > { %v1394_v30 = vpop.permute.xlu1 %1393 }
 0x526   : > { %v1659_v0 = vpop.f32.mrb[4].mxu1 }
 0x527   : > { %v1280_v1 = vadd.f32 %v1659_v0, %v1271_v63  ;;  %v1235_v2 = vpop.f32.mrb[5].mxu1 }
 0x528   : > { %v1278_v4 = vadd.f32 %v1261_v61, %v1235_v2  ;;  %v1660_v5 = vpop.f32.mrb[6].mxu1 }
 0x529   : > { %v1281_v6 = vadd.f32 %v1660_v5, %v1276_v3  ;;  %v1238_v7 = vpop.f32.mrb[7].mxu1  ;;  %v1284_v9 = vmax.f32 %v1280_v1, 0.0 }
 0x52a   : > { %v1279_v8 = vadd.f32 %v1266_v62, %v1238_v7  ;;  %v1282_v11 = vmax.f32 %v1278_v4, 0.0 }
 0x52b   : > { %v1285_v10 = vmax.f32 %v1281_v6, 0.0 }
 0x52c   : > { %v1283_v12 = vmax.f32 %v1279_v8, 0.0 }
 0x52d   : > { %v1287_v13 = vpack.c.bf16 %v1285_v10, %v1284_v9 }
 0x52e   : > { %v1286_v14 = vpack.c.bf16 %v1283_v12, %v1282_v11 }
 0x530   : > { %1661 = vmatprep.subr.bf16.mxu0 %v1286_v14 }
 0x531   : > { %1662 = vmatpush3.bf16.msra.mxu0 %v1286_v14 }
 0x532   : > { %1663 = vmatprep.subr.bf16.mxu0 %v1287_v13 }
 0x535   : > { %1664 = vmatpush3.bf16.msra.mxu0 %v1287_v13 }
 0x538   : > { %1666 = vmatmul.mubr.msk.bf16.vlgmr.msra.gmra.mrb[12].mxu0 %vm673_vm1, %v1731_v15 }
 0x60b   : > { %v1667_v22 = vpop.f32.mrb[12].mxu0 }
 0x60c   : > { %v1375_v23 = vadd.f32 %v1667_v22, %v1309_v18  ;;  %v1366_v24 = vpop.f32.mrb[13].mxu0 }
 0x60d   : > { %v1367_v25 = vadd.f32 %v1366_v24, %v1299_v16  ;;  %v1668_v26 = vpop.f32.mrb[14].mxu0 }
 0x60e   : > { %v1383_v27 = vmax.f32 %v1375_v23, 0.0  ;;  %v1378_v28 = vadd.f32 %v1668_v26, %v1314_v19  ;;  %v1369_v29 = vpop.f32.mrb[15].mxu0 }
 0x60f   : > { %v1381_v31 = vmax.f32 %v1367_v25, 0.0  ;;  %v1370_v32 = vadd.f32 %v1369_v29, %v1304_v17 }
 0x610   : > { %v1403_v33 = vadd.f32 %v1394_v30, %v1383_v27  ;;  %v1384_v34 = vmax.f32 %v1378_v28, 0.0 }
 0x611   : > { %v1401_v36 = vadd.f32 %v1390_v20, %v1381_v31  ;;  %v1382_v37 = vmax.f32 %v1370_v32, 0.0 }
 0x612   : > { %1408 = vst.msk [vmem:[%s386_s13 + $0x10] sm:$0xff] %vm1405_vm2, %v1403_v33  ;;  %v1404_v38 = vadd.f32 %v1396_v35, %v1384_v34 }
 0x613   : > { %1406 = vst.msk [vmem:[%s386_s13] sm:$0xff] %vm1405_vm2, %v1401_v36  ;;  %v1402_v39 = vadd.f32 %v1392_v21, %v1382_v37 }
 0x614   : > { %1409 = vst.msk [vmem:[%s386_s13 + $0x18] sm:$0xff] %vm1405_vm2, %v1404_v38 }
 0x615   : > { %1407 = vst.msk [vmem:[%s386_s13 + $0x8] sm:$0xff] %vm1405_vm2, %v1402_v39 }
 0x616 PF: > { %s21_s17 = sadd.s32 1, %s1738_s17  }
 0x617   : > { %p18_p4 = scmp.ge.s32.totalorder %s21_s17, 4  }
 0x619   :  { %20 = sbr.rel (!%p18_p4) target bundleno = 1 (0x1), region = 100 }

// kernel: tpu_custom_call.1
= control target key start
LH: loop header
LB: loop body
LE: loop exit
PB: predicated region body
PF: predicated region fallthrough
CT: control target
= control target key end

     0   :  { %s1807_s17 = smov 0   ;;  %s1982_s0 = inlined_call_operand.vmem [shape: f32[2,16,34], index: 0, kind: input, shape index: {}]   ;;  %s1983_s1 = inlined_call_operand.vmem [shape: bf16[3,32,16], index: 1, kind: input, shape index: {}]   ;;  %s1984_s2 = inlined_call_operand.vmem [shape: f32[32,1], index: 2, kind: input, shape index: {}]   ;;  %s1985_s3 = inlined_call_operand.vmem [shape: bf16[3,32,32], index: 3, kind: input, shape index: {}]   ;;  %s1986_s4 = inlined_call_operand.vmem [shape: f32[32,1], index: 4, kind: input, shape index: {}]   ;;  %s1987_s5 = inlined_call_operand.vmem [shape: bf16[1,32,32], index: 5, kind: input, shape index: {}]   ;;  %s1988_s6 = inlined_call_operand.vmem [shape: f32[32,1], index: 6, kind: input, shape index: {}]   ;;  %s1989_s7 = inlined_call_operand.vmem [shape: bf16[3,32,32], index: 7, kind: input, shape index: {}]   ;;  %s1990_s8 = inlined_call_operand.vmem [shape: f32[32,1], index: 8, kind: input, shape index: {}]   ;;  %s1991_s9 = inlined_call_operand.vmem [shape: bf16[1,32,32], index: 9, kind: input, shape index: {}]   ;;  %s1992_s10 = inlined_call_operand.vmem [shape: f32[32,1], index: 10, kind: input, shape index: {}]   ;;  %s1993_s11 = inlined_call_operand.vmem [shape: f32[2,32,8], index: 11, kind: output, shape index: {}]  }
   0x1 LB: > { %s1465_s18 = sadd.s32 4294967295, %s1738_s17   ;;  %p1469_p0 = scmp.ge.s32.totalorder %s1738_s17, 1  ;;  %s1738_s17 = sphi %s1807_s17, %s21_s17  }
   0x2   : > { %p337_p1 = scmp.lt.s32.totalorder %s1738_s17, 3 }
   0x4   : > { %p338_p2 = pnand %p1469_p0, %p337_p1 }
   0x5   : > { %p377_p3 = scmp.lt.s32.totalorder (!%p338_p2), %s1465_s18, 1  ;;  %v1710_v0 = vld [vmem:[%s1983_s1 + $0x10] sm:$0xff] (!%p338_p2)   ;;  %vm414_vm0 = vcmask (!%p338_p2), 130048   ;;  %s1740_s25 = smov (!%p338_p2), 127   ;;  %v612_v4 = vld [vmem:[%s1984_s2] sm:$0xff] (!%p338_p2)  ;;  %v1742_v5 = vmov (!%p338_p2), 0  }
   0x6   : > { %341 = sbr.rel (%p338_p2) target bundleno = 1558 (0x616), region = 64  ;;  %1589 = vmatprep.mubr.msk.bf16.mxu0 (!%p338_p2), %vm414_vm0, %v1710_v0  ;;  %s1741_s26 = smov (!%p338_p2), 126   ;;  %1708 = vset.pattern.permute.xlu1 (!%p338_p2), %v1742_v5  ;;  %v614_v6 = vld [vmem:[%s1984_s2 + $0x10] sm:$0xff] (!%p338_p2)  ;;  %v613_v7 = vld [vmem:[%s1984_s2 + $0x8] sm:$0xff] (!%p338_p2)  ;;  %v615_v8 = vld [vmem:[%s1984_s2 + $0x18] sm:$0xff] (!%p338_p2)  ;;  %vm673_vm1 = vcmask (!%p338_p2), 261120  }
   0x7   : > { %1709 = vset.pattern.permute.xlu0 (!%p338_p2), %v1742_v5  ;;  %618 = vperm.xlu1 (!%p338_p2), %1708, %v612_v4   ;;  %v1711_v10 = vld [vmem:[%s1983_s1 + $0x18] sm:$0xff] (!%p338_p2)   ;;  %v1712_v11 = vld [vmem:[%s1983_s1] sm:$0xff] (!%p338_p2)   ;;  %v1713_v13 = vld [vmem:[%s1983_s1 + $0x8] sm:$0xff] (!%p338_p2)   ;;  %s1743_s13 = smov (!%p338_p2), 122   ;;  %s1744_s14 = smov (!%p338_p2), 125   ;;  %vm1405_vm2 = vcmask (!%p338_p2), 64512  }
   0x8   : > { %v1714_v14 = vld [vmem:[%s1983_s1 + $0x20] sm:$0xff] (!%p338_p2)   ;;  %v1715_v15 = vld [vmem:[%s1983_s1 + $0x28] sm:$0xff] (!%p338_p2)   ;;  %v1718_v26 = vld [vmem:[%s1985_s3 + $0x10] sm:$0xff] (!%p338_p2)   ;;  %s1745_s30 = smov (!%p338_p2), 119   ;;  %s1746_s12 = smov (!%p338_p2), 110  }
   0x9   : > { %v1716_v16 = vld [vmem:[%s1985_s3] sm:$0xff] (!%p338_p2)   ;;  %v875_v36 = vld [vmem:[%s1986_s4 + $0x8] sm:$0xff] (!%p338_p2)  ;;  %v877_v40 = vld [vmem:[%s1986_s4 + $0x18] sm:$0xff] (!%p338_p2) }
   0xa   : > { %1617 = vmatprep.mubr.msk.bf16.mxu1 (!%p338_p2), %vm673_vm1, %v1716_v16  ;;  %v874_v37 = vld [vmem:[%s1986_s4] sm:$0xff] (!%p338_p2)  ;;  %v1717_v38 = vld [vmem:[%s1985_s3 + $0x8] sm:$0xff] (!%p338_p2)   ;;  %v876_v41 = vld [vmem:[%s1986_s4 + $0x10] sm:$0xff] (!%p338_p2) }
   0xb   : > { %623 = vperm.xlu1 (!%p338_p2), %1708, %v613_v7   ;;  %v1719_v39 = vld [vmem:[%s1985_s3 + $0x20] sm:$0xff] (!%p338_p2)   ;;  %v913_v42 = vld [vmem:[%s1988_s6 + $0x8] sm:$0xff] (!%p338_p2)  ;;  %v915_v44 = vld [vmem:[%s1988_s6 + $0x18] sm:$0xff] (!%p338_p2) }
   0xc   : > { %v912_v43 = vld [vmem:[%s1988_s6] sm:$0xff] (!%p338_p2)  ;;  %v914_v45 = vld [vmem:[%s1988_s6 + $0x10] sm:$0xff] (!%p338_p2)  ;;  %v1720_v50 = vld [vmem:[%s1985_s3 + $0x18] sm:$0xff] (!%p338_p2)  }
   0xd   : > { %s1995_s18 = smov (!%p377_p3, %s1465_s18), 1  ;;  %v1721_v51 = vld [vmem:[%s1985_s3 + $0x28] sm:$0xff]   ;;  %v1722_v52 = vld [vmem:[%s1987_s5] sm:$0xff]  }
   0xe   : > { %s1544_s21 = sshll.u32 %s1995_s18, 4  ;;  %s1545_s28 = sshll.u32 %s1995_s18, 5 }
   0xf   : > { %s381_s24 = scalar_lea.vmem %s1982_s0, %s1544_s21  ;;  %633 = vperm.xlu1 %1708, %v615_v8  }
  0x10   : > { %v388_v1 = vld [vmem:[%s381_s24] sm:$0xff]  ;;  %v389_v2 = vld [vmem:[%s381_s24 + $0x8] sm:$0xff] }
  0x11   : > { %v390_v3 = vpack.c.bf16 %v389_v2, %v388_v1 }
  0x13   : > { %411 = vrot.lane.b32.xlu0 %v390_v3, %s1740_s25 }
  0x17   : > { %550 = vrot.lane.b32.xlu0 %v390_v3, %s1741_s26 }
  0x1b   : > { %628 = vperm.xlu0 %1709, %v614_v6  }
  0x85   : > { %v412_v9 = vpop.permute.xlu0 %411 }
  0x86   : > { %1587 = vmatprep.subr.bf16.mxu0 %v412_v9  ;;  %v619_v17 = vpop.permute.xlu1 %618 }
  0x87   : > { %1588 = vmatpush3.bf16.msra.mxu0 %v412_v9 }
  0x88   : > { %1593 = vmatprep.subr.bf16.mxu0 %v390_v3 }
  0x89   : > { %v551_v12 = vpop.permute.xlu0 %550 }
  0x8a   : > { %1590 = vmatmul.mubr.msk.bf16.vlgmr.msra.gmra.mrb[0].mxu0 %vm414_vm0, %v1711_v10  ;;  %v624_v18 = vpop.permute.xlu1 %623 }
  0x8b   : > { %1594 = vmatpush3.bf16.msra.mxu0 %v390_v3  ;;  %1595 = vmatprep.mubr.msk.bf16.mxu0 %vm414_vm0, %v1712_v11 }
  0x8c   : > { %1599 = vmatprep.subr.bf16.mxu0 %v551_v12 }
  0x8e   : > { %v634_v23 = vpop.permute.xlu1 %633 }
  0x96   : > { %1596 = vmatmul.mubr.msk.bf16.vlgmr.msra.gmra.mrb[0].mxu0 %vm414_vm0, %v1713_v13 }
  0x97   : > { %1600 = vmatpush3.bf16.msra.mxu0 %v551_v12  ;;  %1601 = vmatprep.mubr.msk.bf16.mxu0 %vm414_vm0, %v1714_v14 }
  0x9a   : > { %v629_v19 = vpop.permute.xlu0 %628 }
  0xa2   : > { %1602 = vmatmul.mubr.msk.bf16.vlgmr.msra.gmra.mrb[0].mxu0 %vm414_vm0, %v1715_v15  ;;  %v1723_v15 = vld [vmem:[%s1987_s5 + $0x8] sm:$0xff]  }
  0xa3   : > { %1609 = vmatprep.mubr.msk.bf16.mxu0 %vm673_vm1, %v1718_v26 }
 0x175   : > { %v1603_v20 = vpop.f32.mrb[0].mxu0 }
 0x176   : > { %v638_v21 = vadd.f32 %v1603_v20, %v629_v19  ;;  %v593_v22 = vpop.f32.mrb[1].mxu0 }
 0x177   : > { %v636_v24 = vadd.f32 %v619_v17, %v593_v22  ;;  %v1604_v25 = vpop.f32.mrb[2].mxu0 }
 0x178   : > { %v639_v27 = vadd.f32 %v1604_v25, %v634_v23  ;;  %v596_v28 = vpop.f32.mrb[3].mxu0  ;;  %v642_v30 = vmax.f32 %v638_v21, 0.0 }
 0x179   : > { %v637_v29 = vadd.f32 %v624_v18, %v596_v28  ;;  %v640_v32 = vmax.f32 %v636_v24, 0.0 }
 0x17a   : > { %v643_v31 = vmax.f32 %v639_v27, 0.0 }
 0x17b   : > { %v641_v33 = vmax.f32 %v637_v29, 0.0 }
 0x17c   : > { %v645_v34 = vpack.c.bf16 %v643_v31, %v642_v30 }
 0x17d   : > { %v644_v35 = vpack.c.bf16 %v641_v33, %v640_v32 }
 0x17f   : > { %809 = vrot.lane.b32.xlu0 %v644_v35, %s1743_s13  ;;  %667 = vrot.lane.b32.xlu1 %v644_v35, %s1744_s14 }
 0x180   : > { %1613 = vmatprep.subr.bf16.mxu1 %v644_v35 }
 0x181   : > { %1614 = vmatpush3.bf16.msra.mxu1 %v644_v35 }
 0x182   : > { %1615 = vmatprep.subr.bf16.mxu1 %v645_v34 }
 0x183   : > { %811 = vrot.lane.b32.xlu0 %v645_v34, %s1743_s13  ;;  %669 = vrot.lane.b32.xlu1 %v645_v34, %s1744_s14  ;;  %s386_s13 = scalar_lea.vmem %s1993_s11, %s1545_s28 }
 0x185   : > { %1616 = vmatpush3.bf16.msra.mxu1 %v645_v34 }
 0x187   : > { %885 = vperm.xlu0 %1709, %v875_v36   ;;  %880 = vperm.xlu1 %1708, %v874_v37  }
 0x188   : > { %1618 = vmatmul.mubr.msk.bf16.vlgmr.msra.gmra.mrb[0].mxu1 %vm673_vm1, %v1717_v38 }
 0x189   : > { %1625 = vmatprep.mubr.msk.bf16.mxu1 %vm673_vm1, %v1719_v39 }
 0x18b   : > { %895 = vperm.xlu0 %1709, %v877_v40   ;;  %890 = vperm.xlu1 %1708, %v876_v41  }
 0x18f   : > { %923 = vperm.xlu0 %1709, %v913_v42   ;;  %918 = vperm.xlu1 %1708, %v912_v43   ;;  %v1255_v43 = vld [vmem:[%s1990_s8 + $0x8] sm:$0xff] }
 0x193   : > { %933 = vperm.xlu0 %1709, %v915_v44   ;;  %928 = vperm.xlu1 %1708, %v914_v45   ;;  %v1254_v44 = vld [vmem:[%s1990_s8] sm:$0xff]  ;;  %v1257_v45 = vld [vmem:[%s1990_s8 + $0x18] sm:$0xff] }
 0x197   : > { %1011 = vrot.lane.b32.xlu0 %v641_v33, %s1744_s14  ;;  %1009 = vrot.lane.b32.xlu1 %v640_v32, %s1744_s14  ;;  %v1724_v33 = vld [vmem:[%s1989_s7 + $0x10] sm:$0xff]  }
 0x19b   : > { %1015 = vrot.lane.b32.xlu0 %v643_v31, %s1744_s14  ;;  %1013 = vrot.lane.b32.xlu1 %v642_v30, %s1744_s14 }
 0x1f1   : > { %v668_v46 = vpop.permute.xlu1 %667  ;;  %v810_v47 = vpop.permute.xlu0 %809 }
 0x1f2   : > { %1605 = vmatprep.subr.bf16.mxu0 %v668_v46  ;;  %1621 = vmatprep.subr.bf16.mxu1 %v810_v47 }
 0x1f3   : > { %1606 = vmatpush3.bf16.msra.mxu0 %v668_v46  ;;  %1622 = vmatpush3.bf16.msra.mxu1 %v810_v47  ;;  %v1256_v46 = vld [vmem:[%s1990_s8 + $0x10] sm:$0xff]  ;;  %v1293_v47 = vld [vmem:[%s1992_s10 + $0x8] sm:$0xff] }
 0x1f5   : > { %v670_v48 = vpop.permute.xlu1 %669  ;;  %v812_v49 = vpop.permute.xlu0 %811 }
 0x1f6   : > { %1607 = vmatprep.subr.bf16.mxu0 %v670_v48  ;;  %1623 = vmatprep.subr.bf16.mxu1 %v812_v49 }
 0x1f7   : > { %1608 = vmatpush3.bf16.msra.mxu0 %v670_v48  ;;  %1624 = vmatpush3.bf16.msra.mxu1 %v812_v49  ;;  %v1292_v48 = vld [vmem:[%s1992_s10] sm:$0xff]  ;;  %v1295_v49 = vld [vmem:[%s1992_s10 + $0x18] sm:$0xff] }
 0x1fa   : > { %1610 = vmatmul.mubr.msk.bf16.vlgmr.msra.gmra.mrb[4].mxu0 %vm673_vm1, %v1720_v50  ;;  %1626 = vmatmul.mubr.msk.bf16.vlgmr.msra.gmra.mrb[0].mxu1 %vm673_vm1, %v1721_v51  ;;  %v1294_v50 = vld [vmem:[%s1992_s10 + $0x10] sm:$0xff] }
 0x1fb   : > { %1633 = vmatprep.mubr.msk.bf16.mxu0 %vm673_vm1, %v1722_v52  ;;  %1641 = vmatprep.mubr.msk.bf16.mxu1 %vm673_vm1, %v1724_v33 }
 0x206   : > { %v881_v53 = vpop.permute.xlu1 %880  ;;  %v886_v54 = vpop.permute.xlu0 %885 }
 0x20a   : > { %v891_v55 = vpop.permute.xlu1 %890  ;;  %v896_v4 = vpop.permute.xlu0 %895 }
 0x20e   : > { %v919_v16 = vpop.permute.xlu1 %918  ;;  %v924_v17 = vpop.permute.xlu0 %923 }
 0x212   : > { %v929_v18 = vpop.permute.xlu1 %928  ;;  %v934_v19 = vpop.permute.xlu0 %933 }
 0x216   : > { %v1010_v20 = vpop.permute.xlu1 %1009  ;;  %v1012_v21 = vpop.permute.xlu0 %1011 }
 0x21a   : > { %v1014_v34 = vpop.permute.xlu1 %1013  ;;  %v1016_v35 = vpop.permute.xlu0 %1015 }
 0x2cd   : > { %v1611_v56 = vpop.f32.mrb[4].mxu0  ;;  %v1627_v57 = vpop.f32.mrb[0].mxu1 }
 0x2ce   : > { %v1669_v58 = vadd.f32 %v1627_v57, %v1611_v56  ;;  %v714_v59 = vpop.f32.mrb[5].mxu0  ;;  %v855_v60 = vpop.f32.mrb[1].mxu1  ;;  %v1727_v56 = vld [vmem:[%s1989_s7 + $0x8] sm:$0xff]   ;;  %v1728_v57 = vld [vmem:[%s1989_s7 + $0x20] sm:$0xff]  }
 0x2cf   : > { %v1670_v61 = vadd.f32 %v855_v60, %v714_v59  ;;  %v1612_v62 = vpop.f32.mrb[6].mxu0  ;;  %v1628_v63 = vpop.f32.mrb[2].mxu1  ;;  %v1729_v59 = vld [vmem:[%s1989_s7 + $0x28] sm:$0xff]   ;;  %v1730_v60 = vld [vmem:[%s1991_s9] sm:$0xff]  }
 0x2d0   : > { %v900_v0 = vadd.f32 %v1669_v58, %v891_v55  ;;  %v1671_v1 = vadd.f32 %v1628_v63, %v1612_v62  ;;  %v717_v2 = vpop.f32.mrb[7].mxu0  ;;  %v858_v3 = vpop.f32.mrb[3].mxu1 }
 0x2d1   : > { %v898_v5 = vadd.f32 %v1670_v61, %v881_v53  ;;  %v1672_v6 = vadd.f32 %v858_v3, %v717_v2  ;;  %v1725_v53 = vld [vmem:[%s1989_s7 + $0x18] sm:$0xff]  }
 0x2d2   : > { %v901_v7 = vadd.f32 %v1671_v1, %v896_v4  ;;  %v904_v9 = vmax.f32 %v900_v0, 0.0 }
 0x2d3   : > { %v899_v8 = vadd.f32 %v1672_v6, %v886_v54  ;;  %v902_v11 = vmax.f32 %v898_v5, 0.0  ;;  %v1726_v54 = vld [vmem:[%s1989_s7] sm:$0xff]  }
 0x2d4   : > { %v905_v10 = vmax.f32 %v901_v7, 0.0 }
 0x2d5   : > { %v903_v12 = vmax.f32 %v899_v8, 0.0 }
 0x2d6   : > { %v907_v13 = vpack.c.bf16 %v905_v10, %v904_v9 }
 0x2d7   : > { %v906_v14 = vpack.c.bf16 %v903_v12, %v902_v11 }
 0x2d9   : > { %1629 = vmatprep.subr.bf16.mxu0 %v906_v14 }
 0x2da   : > { %1630 = vmatpush3.bf16.msra.mxu0 %v906_v14 }
 0x2db   : > { %1631 = vmatprep.subr.bf16.mxu0 %v907_v13 }
 0x2de   : > { %1632 = vmatpush3.bf16.msra.mxu0 %v907_v13 }
 0x2e1   : > { %1634 = vmatmul.mubr.msk.bf16.vlgmr.msra.gmra.mrb[8].mxu0 %vm673_vm1, %v1723_v15  ;;  %v1731_v15 = vld [vmem:[%s1991_s9 + $0x8] sm:$0xff]  }
 0x2e2   : > { %1665 = vmatprep.mubr.msk.bf16.mxu0 %vm673_vm1, %v1730_v60 }
 0x3b4   : > { %v1635_v22 = vpop.f32.mrb[8].mxu0 }
 0x3b5   : > { %v995_v23 = vadd.f32 %v1635_v22, %v929_v18  ;;  %v986_v24 = vpop.f32.mrb[9].mxu0 }
 0x3b6   : > { %v987_v25 = vadd.f32 %v986_v24, %v919_v16  ;;  %v1636_v26 = vpop.f32.mrb[10].mxu0 }
 0x3b7   : > { %v1003_v27 = vmax.f32 %v995_v23, 0.0  ;;  %v998_v28 = vadd.f32 %v1636_v26, %v934_v19  ;;  %v989_v29 = vpop.f32.mrb[11].mxu0 }
 0x3b8   : > { %v1001_v30 = vmax.f32 %v987_v25, 0.0  ;;  %v990_v31 = vadd.f32 %v989_v29, %v924_v17 }
 0x3b9   : > { %v1004_v32 = vmax.f32 %v998_v28, 0.0  ;;  %v1023_v37 = vadd.f32 %v1014_v34, %v1003_v27 }
 0x3ba   : > { %v1002_v36 = vmax.f32 %v990_v31, 0.0  ;;  %v1021_v39 = vadd.f32 %v1010_v20, %v1001_v30 }
 0x3bb   : > { %v1024_v38 = vadd.f32 %v1016_v35, %v1004_v32 }
 0x3bc   : > { %v1022_v40 = vadd.f32 %v1012_v21, %v1002_v36 }
 0x3bd   : > { %v1026_v41 = vpack.c.bf16 %v1024_v38, %v1023_v37 }
 0x3be   : > { %v1025_v42 = vpack.c.bf16 %v1022_v40, %v1021_v39 }
 0x3bf   : > { %1050 = vrot.lane.b32.xlu0 %v1026_v41, %s1745_s30 }
 0x3c0   : > { %1048 = vrot.lane.b32.xlu1 %v1025_v42, %s1745_s30 }
 0x3c3   : > { %1191 = vrot.lane.b32.xlu0 %v1026_v41, %s1746_s12 }
 0x3c4   : > { %1189 = vrot.lane.b32.xlu1 %v1025_v42, %s1746_s12 }
 0x3c7   : > { %1265 = vperm.xlu0 %1709, %v1255_v43  }
 0x3c8   : > { %1260 = vperm.xlu1 %1708, %v1254_v44  }
 0x3cb   : > { %1275 = vperm.xlu0 %1709, %v1257_v45  }
 0x3cc   : > { %1270 = vperm.xlu1 %1708, %v1256_v46  }
 0x3cf   : > { %1303 = vperm.xlu0 %1709, %v1293_v47  }
 0x3d0   : > { %1298 = vperm.xlu1 %1708, %v1292_v48  }
 0x3d3   : > { %1313 = vperm.xlu0 %1709, %v1295_v49  }
 0x3d4   : > { %1308 = vperm.xlu1 %1708, %v1294_v50  }
 0x3d7   : > { %1391 = vrot.lane.b32.xlu0 %v1022_v40, %s1745_s30 }
 0x3d8   : > { %1389 = vrot.lane.b32.xlu1 %v1021_v39, %s1745_s30 }
 0x3db   : > { %1395 = vrot.lane.b32.xlu0 %v1024_v38, %s1745_s30 }
 0x3dc   : > { %1393 = vrot.lane.b32.xlu1 %v1023_v37, %s1745_s30 }
 0x431   : > { %v1051_v52 = vpop.permute.xlu0 %1050 }
 0x432   : > { %v1049_v51 = vpop.permute.xlu1 %1048 }
 0x433   : > { %1637 = vmatprep.subr.bf16.mxu1 %v1049_v51 }
 0x434   : > { %1638 = vmatpush3.bf16.msra.mxu1 %v1049_v51 }
 0x435   : > { %1639 = vmatprep.subr.bf16.mxu1 %v1051_v52  ;;  %v1192_v58 = vpop.permute.xlu0 %1191 }
 0x436   : > { %v1190_v55 = vpop.permute.xlu1 %1189 }
 0x438   : > { %1640 = vmatpush3.bf16.msra.mxu1 %v1051_v52 }
 0x439   : > { %1645 = vmatprep.subr.bf16.mxu1 %v1025_v42 }
 0x43b   : > { %1642 = vmatmul.mubr.msk.bf16.vlgmr.msra.gmra.mrb[4].mxu1 %vm673_vm1, %v1725_v53 }
 0x43c   : > { %1646 = vmatpush3.bf16.msra.mxu1 %v1025_v42  ;;  %1649 = vmatprep.mubr.msk.bf16.mxu1 %vm673_vm1, %v1726_v54 }
 0x43d   : > { %1647 = vmatprep.subr.bf16.mxu1 %v1026_v41 }
 0x440   : > { %1648 = vmatpush3.bf16.msra.mxu1 %v1026_v41 }
 0x441   : > { %1653 = vmatprep.subr.bf16.mxu1 %v1190_v55 }
 0x446   : > { %v1266_v62 = vpop.permute.xlu0 %1265 }
 0x447   : > { %1650 = vmatmul.mubr.msk.bf16.vlgmr.msra.gmra.mrb[4].mxu1 %vm673_vm1, %v1727_v56  ;;  %v1261_v61 = vpop.permute.xlu1 %1260 }
 0x448   : > { %1654 = vmatpush3.bf16.msra.mxu1 %v1190_v55  ;;  %1657 = vmatprep.mubr.msk.bf16.mxu1 %vm673_vm1, %v1728_v57 }
 0x449   : > { %1655 = vmatprep.subr.bf16.mxu1 %v1192_v58 }
 0x44a   : > { %v1276_v3 = vpop.permute.xlu0 %1275 }
 0x44b   : > { %v1271_v63 = vpop.permute.xlu1 %1270 }
 0x44c   : > { %1656 = vmatpush3.bf16.msra.mxu1 %v1192_v58 }
 0x44e   : > { %v1304_v17 = vpop.permute.xlu0 %1303 }
 0x44f   : > { %v1299_v16 = vpop.permute.xlu1 %1298 }
 0x452   : > { %v1314_v19 = vpop.permute.xlu0 %1313 }
 0x453   : > { %1658 = vmatmul.mubr.msk.bf16.vlgmr.msra.gmra.mrb[4].mxu1 %vm673_vm1, %v1729_v59  ;;  %v1309_v18 = vpop.permute.xlu1 %1308 }
 0x456   : > { %v1392_v21 = vpop.permute.xlu0 %1391 }
 0x457   : > { %v1390_v20 = vpop.permute.xlu1 %1389 }
 0x45a   : > { %v1396_v35 = vpop.permute.xlu0 %1395 }
 0x45b   : > { %v1394_v30 = vpop.permute.xlu1 %1393 }
 0x526   : > { %v1659_v0 = vpop.f32.mrb[4].mxu1 }
 0x527   : > { %v1280_v1 = vadd.f32 %v1659_v0, %v1271_v63  ;;  %v1235_v2 = vpop.f32.mrb[5].mxu1 }
 0x528   : > { %v1278_v4 = vadd.f32 %v1261_v61, %v1235_v2  ;;  %v1660_v5 = vpop.f32.mrb[6].mxu1 }
 0x529   : > { %v1281_v6 = vadd.f32 %v1660_v5, %v1276_v3  ;;  %v1238_v7 = vpop.f32.mrb[7].mxu1  ;;  %v1284_v9 = vmax.f32 %v1280_v1, 0.0 }
 0x52a   : > { %v1279_v8 = vadd.f32 %v1266_v62, %v1238_v7  ;;  %v1282_v11 = vmax.f32 %v1278_v4, 0.0 }
 0x52b   : > { %v1285_v10 = vmax.f32 %v1281_v6, 0.0 }
 0x52c   : > { %v1283_v12 = vmax.f32 %v1279_v8, 0.0 }
 0x52d   : > { %v1287_v13 = vpack.c.bf16 %v1285_v10, %v1284_v9 }
 0x52e   : > { %v1286_v14 = vpack.c.bf16 %v1283_v12, %v1282_v11 }
 0x530   : > { %1661 = vmatprep.subr.bf16.mxu0 %v1286_v14 }
 0x531   : > { %1662 = vmatpush3.bf16.msra.mxu0 %v1286_v14 }
 0x532   : > { %1663 = vmatprep.subr.bf16.mxu0 %v1287_v13 }
 0x535   : > { %1664 = vmatpush3.bf16.msra.mxu0 %v1287_v13 }
 0x538   : > { %1666 = vmatmul.mubr.msk.bf16.vlgmr.msra.gmra.mrb[12].mxu0 %vm673_vm1, %v1731_v15 }
 0x60b   : > { %v1667_v22 = vpop.f32.mrb[12].mxu0 }
 0x60c   : > { %v1375_v23 = vadd.f32 %v1667_v22, %v1309_v18  ;;  %v1366_v24 = vpop.f32.mrb[13].mxu0 }
 0x60d   : > { %v1367_v25 = vadd.f32 %v1366_v24, %v1299_v16  ;;  %v1668_v26 = vpop.f32.mrb[14].mxu0 }
 0x60e   : > { %v1383_v27 = vmax.f32 %v1375_v23, 0.0  ;;  %v1378_v28 = vadd.f32 %v1668_v26, %v1314_v19  ;;  %v1369_v29 = vpop.f32.mrb[15].mxu0 }
 0x60f   : > { %v1381_v31 = vmax.f32 %v1367_v25, 0.0  ;;  %v1370_v32 = vadd.f32 %v1369_v29, %v1304_v17 }
 0x610   : > { %v1403_v33 = vadd.f32 %v1394_v30, %v1383_v27  ;;  %v1384_v34 = vmax.f32 %v1378_v28, 0.0 }
 0x611   : > { %v1401_v36 = vadd.f32 %v1390_v20, %v1381_v31  ;;  %v1382_v37 = vmax.f32 %v1370_v32, 0.0 }
 0x612   : > { %1408 = vst.msk [vmem:[%s386_s13 + $0x10] sm:$0xff] %vm1405_vm2, %v1403_v33  ;;  %v1404_v38 = vadd.f32 %v1396_v35, %v1384_v34 }
 0x613   : > { %1406 = vst.msk [vmem:[%s386_s13] sm:$0xff] %vm1405_vm2, %v1401_v36  ;;  %v1402_v39 = vadd.f32 %v1392_v21, %v1382_v37 }
 0x614   : > { %1409 = vst.msk [vmem:[%s386_s13 + $0x18] sm:$0xff] %vm1405_vm2, %v1404_v38 }
 0x615   : > { %1407 = vst.msk [vmem:[%s386_s13 + $0x8] sm:$0xff] %vm1405_vm2, %v1402_v39 }
 0x616 PF: > { %s21_s17 = sadd.s32 1, %s1738_s17  }
 0x617   : > { %p18_p4 = scmp.ge.s32.totalorder %s21_s17, 4  }
 0x619   :  { %20 = sbr.rel (!%p18_p4) target bundleno = 1 (0x1), region = 100 }

</bundles_post_ra>
